<compile_context>
chip_gen: v5e
topology: v5e:2x2
jax: 0.10.0
libtpu: 0.0.40
codegen_flags: <defaults>
</compile_context>

<pallas_src>
import math
import functools

import jax
import jax.numpy as jnp
from jax.experimental import pallas as pl
from jax.experimental.pallas import tpu as pltpu


def _round_up(v, m):
    return (v + m - 1) // m * m


def encoder_block_kernel(x_ref, masks_ref, w1_ref, w2_ref, w3_ref, w4_ref, b4_ref,
                         out_ref, slab_ref, *,
                         W, L, cin, chid, cout, Cp1, Cp2, Mp1, cdt):
    K1 = 10 * Cp1 + 1            # 9 taps + raw-x block + ones row
    K2 = 9 * Cp2 + 1             # 9 taps + ones row

    # Static tap descriptors: lane shift + index of the precomputed border mask row.
    # Ordering (oy, ox) == (kh-1, kw-1) matches the wrapper's weight/mask layout.
    taps = []
    mi = 0
    for oy in (-1, 0, 1):
        for ox in (-1, 0, 1):
            if oy == 0 and ox == 0:
                taps.append((0, None))
            else:
                taps.append(((-(oy * W + ox)) % L, mi))
                mi += 1

    ones_row = jnp.ones((1, L), cdt)

    def write_taps(h, Cp, C):
        # h: (C, L) f32, ReLU already applied.  Pad to Cp rows so every tap store is a
        # full sublane-tile-aligned write and the pad rows are freshly zeroed.
        if Cp > C:
            h = jnp.concatenate([h, jnp.zeros((Cp - C, L), h.dtype)], axis=0)
        hc = h.astype(cdt)
        for t, (shift, m) in enumerate(taps):
            if m is None:
                v = hc
            else:
                v = pltpu.roll(hc, shift, 1) * masks_ref[pl.ds(m, 1), :]
            slab_ref[pl.ds(t * Cp, Cp), :] = v

    x = x_ref[...].astype(jnp.float32)

    # ---- conv_1 (3x3) fused with the identity 1x1 conv as one block-diagonal matmul:
    #      slab1 = [9 taps of relu(x) | raw x | ones]             (K1 rows)
    #      W1    = [[w1 | 0   | b1 ], [0 | wid | bid]]            ((Mp1+cout) x K1)
    write_taps(jnp.maximum(x, 0.0), Cp1, cin)
    xp = x
    if Cp1 > cin:
        xp = jnp.concatenate([x, jnp.zeros((Cp1 - cin, L), x.dtype)], axis=0)
    slab_ref[pl.ds(9 * Cp1, Cp1), :] = xp.astype(cdt)
    slab_ref[pl.ds(10 * Cp1, 1), :] = ones_row
    r1 = jnp.dot(w1_ref[...], slab_ref[pl.ds(0, K1), :],
                 preferred_element_type=jnp.float32)              # (Mp1+cout, L)
    id_out = r1[Mp1:Mp1 + cout]
    h = r1[:chid]

    # ---- relu_2 + conv_2 (bias folded via the ones row) ---------------------------
    write_taps(jnp.maximum(h, 0.0), Cp2, chid)
    slab_ref[pl.ds(9 * Cp2, 1), :] = ones_row
    h = jnp.dot(w2_ref[...], slab_ref[pl.ds(0, K2), :], preferred_element_type=jnp.float32)

    # ---- relu_3 + conv_3 ----------------------------------------------------------
    write_taps(jnp.maximum(h, 0.0), Cp2, chid)
    slab_ref[pl.ds(9 * Cp2, 1), :] = ones_row
    h = jnp.dot(w3_ref[...], slab_ref[pl.ds(0, K2), :], preferred_element_type=jnp.float32)

    # ---- relu_4 + conv_4 (w4/b4 pre-scaled by post_gain) + residual add -----------
    h = jnp.dot(w4_ref[...], jnp.maximum(h, 0.0).astype(cdt),
                preferred_element_type=jnp.float32) + b4_ref[...]
    out_ref[...] = (id_out + h).astype(out_ref.dtype)


def encoder_block_lane(xt, params, *, N, H, W, n_layers,
                       block_batch=None, compute_dtype=None):
    """Core entry point.  xt: (n_in, N*H*W) lane-dense channels-first input.
    Returns (n_out, N*H*W).  Use this directly when stacking blocks to keep the
    lane-dense layout between blocks (no per-block NHWC<->(C,L) HBM transposes)."""
    wid, bid, w1, b1, w2, b2, w3, b3, w4, b4 = params
    cin = xt.shape[0]
    chid = w1.shape[-1]
    cout = wid.shape[-1]
    hw = H * W
    post_gain = 1.0 / (n_layers ** 2)
    f32 = jnp.float32

    if compute_dtype is None:
        # bf16 MXU operands pay off at real dVAE widths; stay f32 at toy widths.
        compute_dtype = jnp.bfloat16 if max(cin, chid, cout) >= 128 else jnp.float32
    cdt = jnp.dtype(compute_dtype)
    sub = 8 if cdt.itemsize == 4 else 16          # sublane tile (f32: 8, bf16: 16)

    Cp1 = _round_up(cin, sub)
    Cp2 = _round_up(chid, sub)
    Mp1 = _round_up(chid, sub)
    K1 = 10 * Cp1 + 1
    K2 = 9 * Cp2 + 1
    Rmax = max(K1, K2)

    # ---- batch tile selection: amortize ~0.35us/step, keep >=2 grid steps (v7x dual
    # ---- TensorCore), stay under a ~12 MiB live working set (safe on v7x 64 MiB VMEM).
    cb, xb = cdt.itemsize, jnp.dtype(xt.dtype).itemsize
    per_lane = ((2 * cin + 2 * cout) * xb + (8 + Rmax) * cb
                + (Mp1 + 2 * cout + 3 * max(Cp1, Cp2)) * 4)
    per_img = max(1, per_lane * hw)
    budget = 12 * 1024 * 1024
    if block_batch is not None:
        bt = max(1, min(N, int(block_batch)))
        while N % bt:
            bt -= 1
    else:
        cap = max(1, min(N // 2 if N >= 2 else 1, budget // per_img))
        divs = [d for d in range(1, N + 1) if N % d == 0]
        good = [d for d in divs if (d * hw) % 128 == 0]
        under = [d for d in good if d <= cap]
        if under:
            bt = max(under)
        elif good:
            bt = min(good)     # smallest lane-128-aligned tile above the budget cap
        else:
            # TODO(synk): no divisor of N gives a 128-multiple lane extent; full-batch
            # block is layout-legal but may exceed the VMEM budget for huge configs.
            bt = N
    L = bt * hw

    # ---- one-time parameter relayout to the lane-dense compute orientation --------
    def pad_in_ch(w, Cp):                         # HWIO (3,3,ci,co) -> (3,3,Cp,co)
        ci = w.shape[2]
        return jnp.pad(w, ((0, 0), (0, 0), (0, Cp - ci), (0, 0))) if Cp > ci else w

    w1p = pad_in_ch(w1, Cp1).reshape(9 * Cp1, chid).T.astype(f32)        # (chid, 9*Cp1)
    top = jnp.concatenate([w1p, jnp.zeros((chid, Cp1), f32), b1.reshape(chid, 1)], axis=1)
    if Mp1 > chid:
        top = jnp.pad(top, ((0, Mp1 - chid), (0, 0)))
    widT = wid.T.astype(f32)
    if Cp1 > cin:
        widT = jnp.pad(widT, ((0, 0), (0, Cp1 - cin)))
    bot = jnp.concatenate([jnp.zeros((cout, 9 * Cp1), f32), widT, bid.reshape(cout, 1)],
                          axis=1)
    W1 = jnp.concatenate([top, bot], axis=0).astype(cdt)                 # (Mp1+cout, K1)

    def w3x3(w, b):
        wp = pad_in_ch(w, Cp2).reshape(9 * Cp2, chid).T.astype(f32)
        return jnp.concatenate([wp, b.reshape(chid, 1)], axis=1).astype(cdt)  # (chid, K2)

    W2 = w3x3(w2, b2)
    W3 = w3x3(w3, b3)
    W4 = (post_gain * w4.T).astype(cdt)                                  # (cout, chid)
    B4 = (post_gain * b4.reshape(cout, 1)).astype(f32)

    # ---- precomputed border masks: one row per non-center tap, tiled per image ----
    yy, xx = jnp.meshgrid(jnp.arange(H), jnp.arange(W), indexing="ij")
    rows = []
    for oy in (-1, 0, 1):
        for ox in (-1, 0, 1):
            if oy == 0 and ox == 0:
                continue
            valid = ((yy + oy >= 0) & (yy + oy < H) & (xx + ox >= 0) & (xx + ox < W))
            rows.append(valid.reshape(-1))
    masks = jnp.tile(jnp.stack(rows).astype(cdt), (1, bt))               # (8, L)

    kparams = (masks, W1, W2, W3, W4, B4)

    def full_spec(a):
        nd = a.ndim
        def im(b):
            return (0,) * nd
        return pl.BlockSpec(a.shape, im)

    kernel = functools.partial(encoder_block_kernel, W=W, L=L, cin=cin, chid=chid,
                               cout=cout, Cp1=Cp1, Cp2=Cp2, Mp1=Mp1, cdt=cdt)

    out = pl.pallas_call(
        kernel,
        out_shape=jax.ShapeDtypeStruct((cout, N * hw), xt.dtype),
        grid_spec=pltpu.PrefetchScalarGridSpec(
            num_scalar_prefetch=0,
            grid=(N // bt,),                                 # bt images per grid step
            in_specs=[pl.BlockSpec((cin, L), lambda b: (0, b))]
                     + [full_spec(p) for p in kparams],
            out_specs=pl.BlockSpec((cout, L), lambda b: (0, b)),
            scratch_shapes=[pltpu.VMEM((Rmax, L), cdt)],     # shared im2col slab
        ),
        compiler_params=pltpu.CompilerParams(
            dimension_semantics=("parallel",),
            vmem_limit_bytes=48 * 1024 * 1024),
    )(xt, *kparams)
    return out


def encoder_block(x, params, *, n_layers, block_batch=None, compute_dtype=None):
    """x: (N, H, W, n_in) NHWC -> (N, H, W, n_out) NHWC (single-block convenience)."""
    N, H, W, cin = x.shape
    cout = params[0].shape[-1]
    xt = x.transpose(3, 0, 1, 2).reshape(cin, N * H * W)
    out = encoder_block_lane(xt, params, N=N, H=H, W=W, n_layers=n_layers,
                             block_batch=block_batch, compute_dtype=compute_dtype)
    return out.reshape(cout, N, H, W).transpose(1, 2, 3, 0)


def encoder_block_ref(x, params, *, n_layers):
    """Pure-JAX reference (lax conv) for correctness checking."""
    wid, bid, w1, b1, w2, b2, w3, b3, w4, b4 = params
    post_gain = 1.0 / (n_layers ** 2)
    dn = ('NHWC', 'HWIO', 'NHWC')

    def conv(h, w, b, pad):
        o = jax.lax.conv_general_dilated(h, w, (1, 1), [(pad, pad), (pad, pad)],
                                         dimension_numbers=dn)
        return o + b.reshape(1, 1, 1, -1)

    id_out = conv(x, wid.reshape(1, 1, *wid.shape), bid, 0)
    h = jax.nn.relu(x)
    h = conv(h, w1, b1, 1)
    h = conv(jax.nn.relu(h), w2, b2, 1)
    h = conv(jax.nn.relu(h), w3, b3, 1)
    h = conv(jax.nn.relu(h), w4.reshape(1, 1, *w4.shape), b4, 0)
    return id_out + post_gain * h


if __name__ == "__main__":
    # Module config (small): n_in=4, n_out=32 -> n_hid=8, n_layers=2 -> post_gain=1/4
    n_in, n_out, n_layers = 4, 32, 2
    n_hid = n_out // 4
    N, H, W = 2, 16, 16

    key = jax.random.PRNGKey(0)
    ks = jax.random.split(key, 6)

    def winit(k, shape, fan_in):
        # matches nn.init.normal_(std=1/sqrt(fan_in)); biases are zeros
        return jax.random.normal(k, shape, jnp.float32) * (1.0 / math.sqrt(fan_in))

    wid = winit(ks[0], (n_in, n_out), 1 * 1 * n_in)
    bid = jnp.zeros((1, n_out), jnp.float32)
    w1 = winit(ks[1], (3, 3, n_in, n_hid), 3 * 3 * n_in)
    b1 = jnp.zeros((1, n_hid), jnp.float32)
    w2 = winit(ks[2], (3, 3, n_hid, n_hid), 3 * 3 * n_hid)
    b2 = jnp.zeros((1, n_hid), jnp.float32)
    w3 = winit(ks[3], (3, 3, n_hid, n_hid), 3 * 3 * n_hid)
    b3 = jnp.zeros((1, n_hid), jnp.float32)
    w4 = winit(ks[4], (n_hid, n_out), 1 * 1 * n_hid)
    b4 = jnp.zeros((1, n_out), jnp.float32)
    params = (wid, bid, w1, b1, w2, b2, w3, b3, w4, b4)

    # Input corresponds to a PyTorch NCHW tensor of shape (2, 4, 16, 16), in NHWC layout.
    x = jax.random.normal(ks[5], (N, H, W, n_in), jnp.float32)

    ref = jax.block_until_ready(encoder_block_ref(x, params, n_layers=n_layers))

    # Auto tiling: bt=1 -> 2 grid steps (megacore-friendly).
    out = jax.block_until_ready(encoder_block(x, params, n_layers=n_layers))
    assert out.shape == (N, H, W, n_out)
    if not jnp.allclose(out, ref, atol=5e-4, rtol=5e-4):
        raise AssertionError("Pallas kernel output mismatch vs JAX reference (bt=1)")

    # Forced multi-image block (bt=2, one grid step): exercises the cross-image
    # wrap-around + border-mask invariant within a single lane block.
    out2 = jax.block_until_ready(encoder_block(x, params, n_layers=n_layers,
                                               block_batch=2))
    if not jnp.allclose(out2, ref, atol=5e-4, rtol=5e-4):
        raise AssertionError("Pallas kernel output mismatch vs JAX reference (bt=2)")

    print("KERNEL_OK")
</pallas_src>

<mosaic_0001>
module attributes {stable_mosaic.version = 11 : i64} {
  func.func @encoder_block_kernel(%arg0: i32, %arg1: memref<4x256xf32, #tpu.memory_space<vmem>>, %arg2: memref<8x256xf32, #tpu.memory_space<vmem>>, %arg3: memref<40x81xf32, #tpu.memory_space<vmem>>, %arg4: memref<8x73xf32, #tpu.memory_space<vmem>>, %arg5: memref<8x73xf32, #tpu.memory_space<vmem>>, %arg6: memref<32x8xf32, #tpu.memory_space<vmem>>, %arg7: memref<32x1xf32, #tpu.memory_space<vmem>>, %arg8: memref<32x256xf32, #tpu.memory_space<vmem>>, %arg9: memref<81x256xf32, #tpu.memory_space<vmem>>) attributes {dimension_semantics = [#tpu.dimension_semantics<parallel>], iteration_bounds = array<i64: 2>, scalar_prefetch = 0 : i64, scratch_operands = 1 : i64, tpu.core_type = #tpu.core_type<tc>, window_params = [{transform_indices = @transform_0, window_bounds = array<i64: 4, 256>}, {pipeline_mode = #tpu.pipeline_mode<synchronous>, transform_indices = @transform_1, window_bounds = array<i64: 8, 256>}, {pipeline_mode = #tpu.pipeline_mode<synchronous>, transform_indices = @transform_2, window_bounds = array<i64: 40, 81>}, {pipeline_mode = #tpu.pipeline_mode<synchronous>, transform_indices = @transform_3, window_bounds = array<i64: 8, 73>}, {pipeline_mode = #tpu.pipeline_mode<synchronous>, transform_indices = @transform_4, window_bounds = array<i64: 8, 73>}, {pipeline_mode = #tpu.pipeline_mode<synchronous>, transform_indices = @transform_5, window_bounds = array<i64: 32, 8>}, {pipeline_mode = #tpu.pipeline_mode<synchronous>, transform_indices = @transform_6, window_bounds = array<i64: 32, 1>}, {transform_indices = @transform_7, window_bounds = array<i64: 32, 256>}]} {
    %cst = arith.constant 1.000000e+00 : f32
    %0 = vector.broadcast %cst : f32 to vector<1x256xf32>
    %c0 = arith.constant 0 : index
    %c0_0 = arith.constant 0 : index
    %1 = vector.load %arg1[%c0, %c0_0] : memref<4x256xf32, #tpu.memory_space<vmem>>, vector<4x256xf32>
    %cst_1 = arith.constant 0.000000e+00 : f32
    %2 = vector.broadcast %cst_1 : f32 to vector<4x256xf32>
    %3 = arith.maximumf %1, %2 : vector<4x256xf32>
    %cst_2 = arith.constant 0.000000e+00 : f32
    %4 = vector.broadcast %cst_2 : f32 to vector<4x256xf32>
    %5 = tpu.concatenate %3, %4 in 0 : vector<4x256xf32>, vector<4x256xf32> -> vector<8x256xf32>
    %c17_i32 = arith.constant 17 : i32
    %6 = tpu.dynamic_rotate %5 by %c17_i32 dim 1 : vector<8x256xf32>, i32 -> vector<8x256xf32>
    %c0_3 = arith.constant 0 : index
    %c0_4 = arith.constant 0 : index
    %7 = vector.load %arg2[%c0_3, %c0_4] : memref<8x256xf32, #tpu.memory_space<vmem>>, vector<1x256xf32>
    %8 = vector.broadcast %7 : vector<1x256xf32> to vector<8x256xf32>
    %9 = arith.mulf %6, %8 : vector<8x256xf32>
    %c0_5 = arith.constant 0 : index
    %c0_6 = arith.constant 0 : index
    %10 = vector.load %arg9[%c0_5, %c0_6] : memref<81x256xf32, #tpu.memory_space<vmem>>, vector<8x256xf32>
    tpu.vector_store %arg9[%c0_5, %c0_6], %9 {strides = array<i32>} : memref<81x256xf32, #tpu.memory_space<vmem>>, vector<8x256xf32>,
    %c16_i32 = arith.constant 16 : i32
    %11 = tpu.dynamic_rotate %5 by %c16_i32 dim 1 : vector<8x256xf32>, i32 -> vector<8x256xf32>
    %c1 = arith.constant 1 : index
    %c0_7 = arith.constant 0 : index
    %12 = vector.load %arg2[%c1, %c0_7] : memref<8x256xf32, #tpu.memory_space<vmem>>, vector<1x256xf32>
    %13 = vector.broadcast %12 : vector<1x256xf32> to vector<8x256xf32>
    %14 = arith.mulf %11, %13 : vector<8x256xf32>
    %c8 = arith.constant 8 : index
    %c0_8 = arith.constant 0 : index
    %15 = vector.load %arg9[%c8, %c0_8] : memref<81x256xf32, #tpu.memory_space<vmem>>, vector<8x256xf32>
    tpu.vector_store %arg9[%c8, %c0_8], %14 {strides = array<i32>} : memref<81x256xf32, #tpu.memory_space<vmem>>, vector<8x256xf32>,
    %c15_i32 = arith.constant 15 : i32
    %16 = tpu.dynamic_rotate %5 by %c15_i32 dim 1 : vector<8x256xf32>, i32 -> vector<8x256xf32>
    %c2 = arith.constant 2 : index
    %c0_9 = arith.constant 0 : index
    %17 = vector.load %arg2[%c2, %c0_9] : memref<8x256xf32, #tpu.memory_space<vmem>>, vector<1x256xf32>
    %18 = vector.broadcast %17 : vector<1x256xf32> to vector<8x256xf32>
    %19 = arith.mulf %16, %18 : vector<8x256xf32>
    %c16 = arith.constant 16 : index
    %c0_10 = arith.constant 0 : index
    %20 = vector.load %arg9[%c16, %c0_10] : memref<81x256xf32, #tpu.memory_space<vmem>>, vector<8x256xf32>
    tpu.vector_store %arg9[%c16, %c0_10], %19 {strides = array<i32>} : memref<81x256xf32, #tpu.memory_space<vmem>>, vector<8x256xf32>,
    %c1_i32 = arith.constant 1 : i32
    %21 = tpu.dynamic_rotate %5 by %c1_i32 dim 1 : vector<8x256xf32>, i32 -> vector<8x256xf32>
    %c3 = arith.constant 3 : index
    %c0_11 = arith.constant 0 : index
    %22 = vector.load %arg2[%c3, %c0_11] : memref<8x256xf32, #tpu.memory_space<vmem>>, vector<1x256xf32>
    %23 = vector.broadcast %22 : vector<1x256xf32> to vector<8x256xf32>
    %24 = arith.mulf %21, %23 : vector<8x256xf32>
    %c24 = arith.constant 24 : index
    %c0_12 = arith.constant 0 : index
    %25 = vector.load %arg9[%c24, %c0_12] : memref<81x256xf32, #tpu.memory_space<vmem>>, vector<8x256xf32>
    tpu.vector_store %arg9[%c24, %c0_12], %24 {strides = array<i32>} : memref<81x256xf32, #tpu.memory_space<vmem>>, vector<8x256xf32>,
    %c32 = arith.constant 32 : index
    %c0_13 = arith.constant 0 : index
    %26 = vector.load %arg9[%c32, %c0_13] : memref<81x256xf32, #tpu.memory_space<vmem>>, vector<8x256xf32>
    tpu.vector_store %arg9[%c32, %c0_13], %5 {strides = array<i32>} : memref<81x256xf32, #tpu.memory_space<vmem>>, vector<8x256xf32>,
    %c255_i32 = arith.constant 255 : i32
    %27 = tpu.dynamic_rotate %5 by %c255_i32 dim 1 : vector<8x256xf32>, i32 -> vector<8x256xf32>
    %c4 = arith.constant 4 : index
    %c0_14 = arith.constant 0 : index
    %28 = vector.load %arg2[%c4, %c0_14] : memref<8x256xf32, #tpu.memory_space<vmem>>, vector<1x256xf32>
    %29 = vector.broadcast %28 : vector<1x256xf32> to vector<8x256xf32>
    %30 = arith.mulf %27, %29 : vector<8x256xf32>
    %c40 = arith.constant 40 : index
    %c0_15 = arith.constant 0 : index
    %31 = vector.load %arg9[%c40, %c0_15] : memref<81x256xf32, #tpu.memory_space<vmem>>, vector<8x256xf32>
    tpu.vector_store %arg9[%c40, %c0_15], %30 {strides = array<i32>} : memref<81x256xf32, #tpu.memory_space<vmem>>, vector<8x256xf32>,
    %c241_i32 = arith.constant 241 : i32
    %32 = tpu.dynamic_rotate %5 by %c241_i32 dim 1 : vector<8x256xf32>, i32 -> vector<8x256xf32>
    %c5 = arith.constant 5 : index
    %c0_16 = arith.constant 0 : index
    %33 = vector.load %arg2[%c5, %c0_16] : memref<8x256xf32, #tpu.memory_space<vmem>>, vector<1x256xf32>
    %34 = vector.broadcast %33 : vector<1x256xf32> to vector<8x256xf32>
    %35 = arith.mulf %32, %34 : vector<8x256xf32>
    %c48 = arith.constant 48 : index
    %c0_17 = arith.constant 0 : index
    %36 = vector.load %arg9[%c48, %c0_17] : memref<81x256xf32, #tpu.memory_space<vmem>>, vector<8x256xf32>
    tpu.vector_store %arg9[%c48, %c0_17], %35 {strides = array<i32>} : memref<81x256xf32, #tpu.memory_space<vmem>>, vector<8x256xf32>,
    %c240_i32 = arith.constant 240 : i32
    %37 = tpu.dynamic_rotate %5 by %c240_i32 dim 1 : vector<8x256xf32>, i32 -> vector<8x256xf32>
    %c6 = arith.constant 6 : index
    %c0_18 = arith.constant 0 : index
    %38 = vector.load %arg2[%c6, %c0_18] : memref<8x256xf32, #tpu.memory_space<vmem>>, vector<1x256xf32>
    %39 = vector.broadcast %38 : vector<1x256xf32> to vector<8x256xf32>
    %40 = arith.mulf %37, %39 : vector<8x256xf32>
    %c56 = arith.constant 56 : index
    %c0_19 = arith.constant 0 : index
    %41 = vector.load %arg9[%c56, %c0_19] : memref<81x256xf32, #tpu.memory_space<vmem>>, vector<8x256xf32>
    tpu.vector_store %arg9[%c56, %c0_19], %40 {strides = array<i32>} : memref<81x256xf32, #tpu.memory_space<vmem>>, vector<8x256xf32>,
    %c239_i32 = arith.constant 239 : i32
    %42 = tpu.dynamic_rotate %5 by %c239_i32 dim 1 : vector<8x256xf32>, i32 -> vector<8x256xf32>
    %c7 = arith.constant 7 : index
    %c0_20 = arith.constant 0 : index
    %43 = vector.load %arg2[%c7, %c0_20] : memref<8x256xf32, #tpu.memory_space<vmem>>, vector<1x256xf32>
    %44 = vector.broadcast %43 : vector<1x256xf32> to vector<8x256xf32>
    %45 = arith.mulf %42, %44 : vector<8x256xf32>
    %c64 = arith.constant 64 : index
    %c0_21 = arith.constant 0 : index
    %46 = vector.load %arg9[%c64, %c0_21] : memref<81x256xf32, #tpu.memory_space<vmem>>, vector<8x256xf32>
    tpu.vector_store %arg9[%c64, %c0_21], %45 {strides = array<i32>} : memref<81x256xf32, #tpu.memory_space<vmem>>, vector<8x256xf32>,
    %cst_22 = arith.constant 0.000000e+00 : f32
    %47 = vector.broadcast %cst_22 : f32 to vector<4x256xf32>
    %48 = tpu.concatenate %1, %47 in 0 : vector<4x256xf32>, vector<4x256xf32> -> vector<8x256xf32>
    %c72 = arith.constant 72 : index
    %c0_23 = arith.constant 0 : index
    %49 = vector.load %arg9[%c72, %c0_23] : memref<81x256xf32, #tpu.memory_space<vmem>>, vector<8x256xf32>
    tpu.vector_store %arg9[%c72, %c0_23], %48 {strides = array<i32>} : memref<81x256xf32, #tpu.memory_space<vmem>>, vector<8x256xf32>,
    %c80 = arith.constant 80 : index
    %c0_24 = arith.constant 0 : index
    %50 = vector.load %arg9[%c80, %c0_24] : memref<81x256xf32, #tpu.memory_space<vmem>>, vector<1x256xf32>
    tpu.vector_store %arg9[%c80, %c0_24], %0 {strides = array<i32>} : memref<81x256xf32, #tpu.memory_space<vmem>>, vector<1x256xf32>,
    %c0_25 = arith.constant 0 : index
    %c0_26 = arith.constant 0 : index
    %51 = vector.load %arg3[%c0_25, %c0_26] : memref<40x81xf32, #tpu.memory_space<vmem>>, vector<40x81xf32>
    %c0_27 = arith.constant 0 : index
    %c0_28 = arith.constant 0 : index
    %52 = vector.load %arg9[%c0_27, %c0_28] : memref<81x256xf32, #tpu.memory_space<vmem>>, vector<81x256xf32>
    %cst_29 = arith.constant dense<0.000000e+00> : vector<40x256xf32>
    %53 = tpu.matmul %51, %52, %cst_29 {dimension_numbers = #tpu.dot_dimension_numbers<[1], [0], [0], [1], [0, 0, 1, 1], [], []>} : vector<40x81xf32>, vector<81x256xf32>, vector<40x256xf32> -> vector<40x256xf32>
    %54 = vector.extract_strided_slice %53 {offsets = [8, 0], sizes = [32, 256], strides = [1, 1]} : vector<40x256xf32> to vector<32x256xf32>
    %55 = vector.extract_strided_slice %53 {offsets = [0, 0], sizes = [8, 256], strides = [1, 1]} : vector<40x256xf32> to vector<8x256xf32>
    %cst_30 = arith.constant 0.000000e+00 : f32
    %56 = vector.broadcast %cst_30 : f32 to vector<8x256xf32>
    %57 = arith.maximumf %55, %56 : vector<8x256xf32>
    %c17_i32_31 = arith.constant 17 : i32
    %58 = tpu.dynamic_rotate %57 by %c17_i32_31 dim 1 : vector<8x256xf32>, i32 -> vector<8x256xf32>
    %c0_32 = arith.constant 0 : index
    %c0_33 = arith.constant 0 : index
    %59 = vector.load %arg2[%c0_32, %c0_33] : memref<8x256xf32, #tpu.memory_space<vmem>>, vector<1x256xf32>
    %60 = vector.broadcast %59 : vector<1x256xf32> to vector<8x256xf32>
    %61 = arith.mulf %58, %60 : vector<8x256xf32>
    %c0_34 = arith.constant 0 : index
    %c0_35 = arith.constant 0 : index
    %62 = vector.load %arg9[%c0_34, %c0_35] : memref<81x256xf32, #tpu.memory_space<vmem>>, vector<8x256xf32>
    tpu.vector_store %arg9[%c0_34, %c0_35], %61 {strides = array<i32>} : memref<81x256xf32, #tpu.memory_space<vmem>>, vector<8x256xf32>,
    %c16_i32_36 = arith.constant 16 : i32
    %63 = tpu.dynamic_rotate %57 by %c16_i32_36 dim 1 : vector<8x256xf32>, i32 -> vector<8x256xf32>
    %c1_37 = arith.constant 1 : index
    %c0_38 = arith.constant 0 : index
    %64 = vector.load %arg2[%c1_37, %c0_38] : memref<8x256xf32, #tpu.memory_space<vmem>>, vector<1x256xf32>
    %65 = vector.broadcast %64 : vector<1x256xf32> to vector<8x256xf32>
    %66 = arith.mulf %63, %65 : vector<8x256xf32>
    %c8_39 = arith.constant 8 : index
    %c0_40 = arith.constant 0 : index
    %67 = vector.load %arg9[%c8_39, %c0_40] : memref<81x256xf32, #tpu.memory_space<vmem>>, vector<8x256xf32>
    tpu.vector_store %arg9[%c8_39, %c0_40], %66 {strides = array<i32>} : memref<81x256xf32, #tpu.memory_space<vmem>>, vector<8x256xf32>,
    %c15_i32_41 = arith.constant 15 : i32
    %68 = tpu.dynamic_rotate %57 by %c15_i32_41 dim 1 : vector<8x256xf32>, i32 -> vector<8x256xf32>
    %c2_42 = arith.constant 2 : index
    %c0_43 = arith.constant 0 : index
    %69 = vector.load %arg2[%c2_42, %c0_43] : memref<8x256xf32, #tpu.memory_space<vmem>>, vector<1x256xf32>
    %70 = vector.broadcast %69 : vector<1x256xf32> to vector<8x256xf32>
    %71 = arith.mulf %68, %70 : vector<8x256xf32>
    %c16_44 = arith.constant 16 : index
    %c0_45 = arith.constant 0 : index
    %72 = vector.load %arg9[%c16_44, %c0_45] : memref<81x256xf32, #tpu.memory_space<vmem>>, vector<8x256xf32>
    tpu.vector_store %arg9[%c16_44, %c0_45], %71 {strides = array<i32>} : memref<81x256xf32, #tpu.memory_space<vmem>>, vector<8x256xf32>,
    %c1_i32_46 = arith.constant 1 : i32
    %73 = tpu.dynamic_rotate %57 by %c1_i32_46 dim 1 : vector<8x256xf32>, i32 -> vector<8x256xf32>
    %c3_47 = arith.constant 3 : index
    %c0_48 = arith.constant 0 : index
    %74 = vector.load %arg2[%c3_47, %c0_48] : memref<8x256xf32, #tpu.memory_space<vmem>>, vector<1x256xf32>
    %75 = vector.broadcast %74 : vector<1x256xf32> to vector<8x256xf32>
    %76 = arith.mulf %73, %75 : vector<8x256xf32>
    %c24_49 = arith.constant 24 : index
    %c0_50 = arith.constant 0 : index
    %77 = vector.load %arg9[%c24_49, %c0_50] : memref<81x256xf32, #tpu.memory_space<vmem>>, vector<8x256xf32>
    tpu.vector_store %arg9[%c24_49, %c0_50], %76 {strides = array<i32>} : memref<81x256xf32, #tpu.memory_space<vmem>>, vector<8x256xf32>,
    %c32_51 = arith.constant 32 : index
    %c0_52 = arith.constant 0 : index
    %78 = vector.load %arg9[%c32_51, %c0_52] : memref<81x256xf32, #tpu.memory_space<vmem>>, vector<8x256xf32>
    tpu.vector_store %arg9[%c32_51, %c0_52], %57 {strides = array<i32>} : memref<81x256xf32, #tpu.memory_space<vmem>>, vector<8x256xf32>,
    %c255_i32_53 = arith.constant 255 : i32
    %79 = tpu.dynamic_rotate %57 by %c255_i32_53 dim 1 : vector<8x256xf32>, i32 -> vector<8x256xf32>
    %c4_54 = arith.constant 4 : index
    %c0_55 = arith.constant 0 : index
    %80 = vector.load %arg2[%c4_54, %c0_55] : memref<8x256xf32, #tpu.memory_space<vmem>>, vector<1x256xf32>
    %81 = vector.broadcast %80 : vector<1x256xf32> to vector<8x256xf32>
    %82 = arith.mulf %79, %81 : vector<8x256xf32>
    %c40_56 = arith.constant 40 : index
    %c0_57 = arith.constant 0 : index
    %83 = vector.load %arg9[%c40_56, %c0_57] : memref<81x256xf32, #tpu.memory_space<vmem>>, vector<8x256xf32>
    tpu.vector_store %arg9[%c40_56, %c0_57], %82 {strides = array<i32>} : memref<81x256xf32, #tpu.memory_space<vmem>>, vector<8x256xf32>,
    %c241_i32_58 = arith.constant 241 : i32
    %84 = tpu.dynamic_rotate %57 by %c241_i32_58 dim 1 : vector<8x256xf32>, i32 -> vector<8x256xf32>
    %c5_59 = arith.constant 5 : index
    %c0_60 = arith.constant 0 : index
    %85 = vector.load %arg2[%c5_59, %c0_60] : memref<8x256xf32, #tpu.memory_space<vmem>>, vector<1x256xf32>
    %86 = vector.broadcast %85 : vector<1x256xf32> to vector<8x256xf32>
    %87 = arith.mulf %84, %86 : vector<8x256xf32>
    %c48_61 = arith.constant 48 : index
    %c0_62 = arith.constant 0 : index
    %88 = vector.load %arg9[%c48_61, %c0_62] : memref<81x256xf32, #tpu.memory_space<vmem>>, vector<8x256xf32>
    tpu.vector_store %arg9[%c48_61, %c0_62], %87 {strides = array<i32>} : memref<81x256xf32, #tpu.memory_space<vmem>>, vector<8x256xf32>,
    %c240_i32_63 = arith.constant 240 : i32
    %89 = tpu.dynamic_rotate %57 by %c240_i32_63 dim 1 : vector<8x256xf32>, i32 -> vector<8x256xf32>
    %c6_64 = arith.constant 6 : index
    %c0_65 = arith.constant 0 : index
    %90 = vector.load %arg2[%c6_64, %c0_65] : memref<8x256xf32, #tpu.memory_space<vmem>>, vector<1x256xf32>
    %91 = vector.broadcast %90 : vector<1x256xf32> to vector<8x256xf32>
    %92 = arith.mulf %89, %91 : vector<8x256xf32>
    %c56_66 = arith.constant 56 : index
    %c0_67 = arith.constant 0 : index
    %93 = vector.load %arg9[%c56_66, %c0_67] : memref<81x256xf32, #tpu.memory_space<vmem>>, vector<8x256xf32>
    tpu.vector_store %arg9[%c56_66, %c0_67], %92 {strides = array<i32>} : memref<81x256xf32, #tpu.memory_space<vmem>>, vector<8x256xf32>,
    %c239_i32_68 = arith.constant 239 : i32
    %94 = tpu.dynamic_rotate %57 by %c239_i32_68 dim 1 : vector<8x256xf32>, i32 -> vector<8x256xf32>
    %c7_69 = arith.constant 7 : index
    %c0_70 = arith.constant 0 : index
    %95 = vector.load %arg2[%c7_69, %c0_70] : memref<8x256xf32, #tpu.memory_space<vmem>>, vector<1x256xf32>
    %96 = vector.broadcast %95 : vector<1x256xf32> to vector<8x256xf32>
    %97 = arith.mulf %94, %96 : vector<8x256xf32>
    %c64_71 = arith.constant 64 : index
    %c0_72 = arith.constant 0 : index
    %98 = vector.load %arg9[%c64_71, %c0_72] : memref<81x256xf32, #tpu.memory_space<vmem>>, vector<8x256xf32>
    tpu.vector_store %arg9[%c64_71, %c0_72], %97 {strides = array<i32>} : memref<81x256xf32, #tpu.memory_space<vmem>>, vector<8x256xf32>,
    %c72_73 = arith.constant 72 : index
    %c0_74 = arith.constant 0 : index
    %99 = vector.load %arg9[%c72_73, %c0_74] : memref<81x256xf32, #tpu.memory_space<vmem>>, vector<1x256xf32>
    tpu.vector_store %arg9[%c72_73, %c0_74], %0 {strides = array<i32>} : memref<81x256xf32, #tpu.memory_space<vmem>>, vector<1x256xf32>,
    %c0_75 = arith.constant 0 : index
    %c0_76 = arith.constant 0 : index
    %100 = vector.load %arg4[%c0_75, %c0_76] : memref<8x73xf32, #tpu.memory_space<vmem>>, vector<8x73xf32>
    %c0_77 = arith.constant 0 : index
    %c0_78 = arith.constant 0 : index
    %101 = vector.load %arg9[%c0_77, %c0_78] : memref<81x256xf32, #tpu.memory_space<vmem>>, vector<73x256xf32>
    %cst_79 = arith.constant dense<0.000000e+00> : vector<8x256xf32>
    %102 = tpu.matmul %100, %101, %cst_79 {dimension_numbers = #tpu.dot_dimension_numbers<[1], [0], [0], [1], [0, 0, 1, 1], [], []>} : vector<8x73xf32>, vector<73x256xf32>, vector<8x256xf32> -> vector<8x256xf32>
    %cst_80 = arith.constant 0.000000e+00 : f32
    %103 = vector.broadcast %cst_80 : f32 to vector<8x256xf32>
    %104 = arith.maximumf %102, %103 : vector<8x256xf32>
    %c17_i32_81 = arith.constant 17 : i32
    %105 = tpu.dynamic_rotate %104 by %c17_i32_81 dim 1 : vector<8x256xf32>, i32 -> vector<8x256xf32>
    %c0_82 = arith.constant 0 : index
    %c0_83 = arith.constant 0 : index
    %106 = vector.load %arg2[%c0_82, %c0_83] : memref<8x256xf32, #tpu.memory_space<vmem>>, vector<1x256xf32>
    %107 = vector.broadcast %106 : vector<1x256xf32> to vector<8x256xf32>
    %108 = arith.mulf %105, %107 : vector<8x256xf32>
    %c0_84 = arith.constant 0 : index
    %c0_85 = arith.constant 0 : index
    %109 = vector.load %arg9[%c0_84, %c0_85] : memref<81x256xf32, #tpu.memory_space<vmem>>, vector<8x256xf32>
    tpu.vector_store %arg9[%c0_84, %c0_85], %108 {strides = array<i32>} : memref<81x256xf32, #tpu.memory_space<vmem>>, vector<8x256xf32>,
    %c16_i32_86 = arith.constant 16 : i32
    %110 = tpu.dynamic_rotate %104 by %c16_i32_86 dim 1 : vector<8x256xf32>, i32 -> vector<8x256xf32>
    %c1_87 = arith.constant 1 : index
    %c0_88 = arith.constant 0 : index
    %111 = vector.load %arg2[%c1_87, %c0_88] : memref<8x256xf32, #tpu.memory_space<vmem>>, vector<1x256xf32>
    %112 = vector.broadcast %111 : vector<1x256xf32> to vector<8x256xf32>
    %113 = arith.mulf %110, %112 : vector<8x256xf32>
    %c8_89 = arith.constant 8 : index
    %c0_90 = arith.constant 0 : index
    %114 = vector.load %arg9[%c8_89, %c0_90] : memref<81x256xf32, #tpu.memory_space<vmem>>, vector<8x256xf32>
    tpu.vector_store %arg9[%c8_89, %c0_90], %113 {strides = array<i32>} : memref<81x256xf32, #tpu.memory_space<vmem>>, vector<8x256xf32>,
    %c15_i32_91 = arith.constant 15 : i32
    %115 = tpu.dynamic_rotate %104 by %c15_i32_91 dim 1 : vector<8x256xf32>, i32 -> vector<8x256xf32>
    %c2_92 = arith.constant 2 : index
    %c0_93 = arith.constant 0 : index
    %116 = vector.load %arg2[%c2_92, %c0_93] : memref<8x256xf32, #tpu.memory_space<vmem>>, vector<1x256xf32>
    %117 = vector.broadcast %116 : vector<1x256xf32> to vector<8x256xf32>
    %118 = arith.mulf %115, %117 : vector<8x256xf32>
    %c16_94 = arith.constant 16 : index
    %c0_95 = arith.constant 0 : index
    %119 = vector.load %arg9[%c16_94, %c0_95] : memref<81x256xf32, #tpu.memory_space<vmem>>, vector<8x256xf32>
    tpu.vector_store %arg9[%c16_94, %c0_95], %118 {strides = array<i32>} : memref<81x256xf32, #tpu.memory_space<vmem>>, vector<8x256xf32>,
    %c1_i32_96 = arith.constant 1 : i32
    %120 = tpu.dynamic_rotate %104 by %c1_i32_96 dim 1 : vector<8x256xf32>, i32 -> vector<8x256xf32>
    %c3_97 = arith.constant 3 : index
    %c0_98 = arith.constant 0 : index
    %121 = vector.load %arg2[%c3_97, %c0_98] : memref<8x256xf32, #tpu.memory_space<vmem>>, vector<1x256xf32>
    %122 = vector.broadcast %121 : vector<1x256xf32> to vector<8x256xf32>
    %123 = arith.mulf %120, %122 : vector<8x256xf32>
    %c24_99 = arith.constant 24 : index
    %c0_100 = arith.constant 0 : index
    %124 = vector.load %arg9[%c24_99, %c0_100] : memref<81x256xf32, #tpu.memory_space<vmem>>, vector<8x256xf32>
    tpu.vector_store %arg9[%c24_99, %c0_100], %123 {strides = array<i32>} : memref<81x256xf32, #tpu.memory_space<vmem>>, vector<8x256xf32>,
    %c32_101 = arith.constant 32 : index
    %c0_102 = arith.constant 0 : index
    %125 = vector.load %arg9[%c32_101, %c0_102] : memref<81x256xf32, #tpu.memory_space<vmem>>, vector<8x256xf32>
    tpu.vector_store %arg9[%c32_101, %c0_102], %104 {strides = array<i32>} : memref<81x256xf32, #tpu.memory_space<vmem>>, vector<8x256xf32>,
    %c255_i32_103 = arith.constant 255 : i32
    %126 = tpu.dynamic_rotate %104 by %c255_i32_103 dim 1 : vector<8x256xf32>, i32 -> vector<8x256xf32>
    %c4_104 = arith.constant 4 : index
    %c0_105 = arith.constant 0 : index
    %127 = vector.load %arg2[%c4_104, %c0_105] : memref<8x256xf32, #tpu.memory_space<vmem>>, vector<1x256xf32>
    %128 = vector.broadcast %127 : vector<1x256xf32> to vector<8x256xf32>
    %129 = arith.mulf %126, %128 : vector<8x256xf32>
    %c40_106 = arith.constant 40 : index
    %c0_107 = arith.constant 0 : index
    %130 = vector.load %arg9[%c40_106, %c0_107] : memref<81x256xf32, #tpu.memory_space<vmem>>, vector<8x256xf32>
    tpu.vector_store %arg9[%c40_106, %c0_107], %129 {strides = array<i32>} : memref<81x256xf32, #tpu.memory_space<vmem>>, vector<8x256xf32>,
    %c241_i32_108 = arith.constant 241 : i32
    %131 = tpu.dynamic_rotate %104 by %c241_i32_108 dim 1 : vector<8x256xf32>, i32 -> vector<8x256xf32>
    %c5_109 = arith.constant 5 : index
    %c0_110 = arith.constant 0 : index
    %132 = vector.load %arg2[%c5_109, %c0_110] : memref<8x256xf32, #tpu.memory_space<vmem>>, vector<1x256xf32>
    %133 = vector.broadcast %132 : vector<1x256xf32> to vector<8x256xf32>
    %134 = arith.mulf %131, %133 : vector<8x256xf32>
    %c48_111 = arith.constant 48 : index
    %c0_112 = arith.constant 0 : index
    %135 = vector.load %arg9[%c48_111, %c0_112] : memref<81x256xf32, #tpu.memory_space<vmem>>, vector<8x256xf32>
    tpu.vector_store %arg9[%c48_111, %c0_112], %134 {strides = array<i32>} : memref<81x256xf32, #tpu.memory_space<vmem>>, vector<8x256xf32>,
    %c240_i32_113 = arith.constant 240 : i32
    %136 = tpu.dynamic_rotate %104 by %c240_i32_113 dim 1 : vector<8x256xf32>, i32 -> vector<8x256xf32>
    %c6_114 = arith.constant 6 : index
    %c0_115 = arith.constant 0 : index
    %137 = vector.load %arg2[%c6_114, %c0_115] : memref<8x256xf32, #tpu.memory_space<vmem>>, vector<1x256xf32>
    %138 = vector.broadcast %137 : vector<1x256xf32> to vector<8x256xf32>
    %139 = arith.mulf %136, %138 : vector<8x256xf32>
    %c56_116 = arith.constant 56 : index
    %c0_117 = arith.constant 0 : index
    %140 = vector.load %arg9[%c56_116, %c0_117] : memref<81x256xf32, #tpu.memory_space<vmem>>, vector<8x256xf32>
    tpu.vector_store %arg9[%c56_116, %c0_117], %139 {strides = array<i32>} : memref<81x256xf32, #tpu.memory_space<vmem>>, vector<8x256xf32>,
    %c239_i32_118 = arith.constant 239 : i32
    %141 = tpu.dynamic_rotate %104 by %c239_i32_118 dim 1 : vector<8x256xf32>, i32 -> vector<8x256xf32>
    %c7_119 = arith.constant 7 : index
    %c0_120 = arith.constant 0 : index
    %142 = vector.load %arg2[%c7_119, %c0_120] : memref<8x256xf32, #tpu.memory_space<vmem>>, vector<1x256xf32>
    %143 = vector.broadcast %142 : vector<1x256xf32> to vector<8x256xf32>
    %144 = arith.mulf %141, %143 : vector<8x256xf32>
    %c64_121 = arith.constant 64 : index
    %c0_122 = arith.constant 0 : index
    %145 = vector.load %arg9[%c64_121, %c0_122] : memref<81x256xf32, #tpu.memory_space<vmem>>, vector<8x256xf32>
    tpu.vector_store %arg9[%c64_121, %c0_122], %144 {strides = array<i32>} : memref<81x256xf32, #tpu.memory_space<vmem>>, vector<8x256xf32>,
    %c72_123 = arith.constant 72 : index
    %c0_124 = arith.constant 0 : index
    %146 = vector.load %arg9[%c72_123, %c0_124] : memref<81x256xf32, #tpu.memory_space<vmem>>, vector<1x256xf32>
    tpu.vector_store %arg9[%c72_123, %c0_124], %0 {strides = array<i32>} : memref<81x256xf32, #tpu.memory_space<vmem>>, vector<1x256xf32>,
    %c0_125 = arith.constant 0 : index
    %c0_126 = arith.constant 0 : index
    %147 = vector.load %arg5[%c0_125, %c0_126] : memref<8x73xf32, #tpu.memory_space<vmem>>, vector<8x73xf32>
    %c0_127 = arith.constant 0 : index
    %c0_128 = arith.constant 0 : index
    %148 = vector.load %arg9[%c0_127, %c0_128] : memref<81x256xf32, #tpu.memory_space<vmem>>, vector<73x256xf32>
    %cst_129 = arith.constant dense<0.000000e+00> : vector<8x256xf32>
    %149 = tpu.matmul %147, %148, %cst_129 {dimension_numbers = #tpu.dot_dimension_numbers<[1], [0], [0], [1], [0, 0, 1, 1], [], []>} : vector<8x73xf32>, vector<73x256xf32>, vector<8x256xf32> -> vector<8x256xf32>
    %c0_130 = arith.constant 0 : index
    %c0_131 = arith.constant 0 : index
    %150 = vector.load %arg6[%c0_130, %c0_131] : memref<32x8xf32, #tpu.memory_space<vmem>>, vector<32x8xf32>
    %cst_132 = arith.constant 0.000000e+00 : f32
    %151 = vector.broadcast %cst_132 : f32 to vector<8x256xf32>
    %152 = arith.maximumf %149, %151 : vector<8x256xf32>
    %cst_133 = arith.constant dense<0.000000e+00> : vector<32x256xf32>
    %153 = tpu.matmul %150, %152, %cst_133 {dimension_numbers = #tpu.dot_dimension_numbers<[1], [0], [0], [1], [0, 0, 1, 1], [], []>} : vector<32x8xf32>, vector<8x256xf32>, vector<32x256xf32> -> vector<32x256xf32>
    %c0_134 = arith.constant 0 : index
    %c0_135 = arith.constant 0 : index
    %154 = vector.load %arg7[%c0_134, %c0_135] : memref<32x1xf32, #tpu.memory_space<vmem>>, vector<32x1xf32>
    %155 = vector.broadcast %154 : vector<32x1xf32> to vector<32x256xf32>
    %156 = arith.addf %153, %155 : vector<32x256xf32>
    %157 = arith.addf %54, %156 : vector<32x256xf32>
    %c0_136 = arith.constant 0 : index
    %c0_137 = arith.constant 0 : index
    %158 = vector.load %arg8[%c0_136, %c0_137] : memref<32x256xf32, #tpu.memory_space<vmem>>, vector<32x256xf32>
    tpu.vector_store %arg8[%c0_136, %c0_137], %157 {strides = array<i32>} : memref<32x256xf32, #tpu.memory_space<vmem>>, vector<32x256xf32>,
    return
  }
  func.func @transform_0(%arg0: i32) -> (i32, i32) {
    %c0_i32 = arith.constant 0 : i32
    %c0_i32_0 = arith.constant 0 : i32
    return %c0_i32, %arg0 : i32, i32
  }
  func.func @transform_1(%arg0: i32) -> (i32, i32) {
    %c0_i32 = arith.constant 0 : i32
    %c0_i32_0 = arith.constant 0 : i32
    %c0_i32_1 = arith.constant 0 : i32
    return %c0_i32, %c0_i32_0 : i32, i32
  }
  func.func @transform_2(%arg0: i32) -> (i32, i32) {
    %c0_i32 = arith.constant 0 : i32
    %c0_i32_0 = arith.constant 0 : i32
    %c0_i32_1 = arith.constant 0 : i32
    return %c0_i32, %c0_i32_0 : i32, i32
  }
  func.func @transform_3(%arg0: i32) -> (i32, i32) {
    %c0_i32 = arith.constant 0 : i32
    %c0_i32_0 = arith.constant 0 : i32
    %c0_i32_1 = arith.constant 0 : i32
    return %c0_i32, %c0_i32_0 : i32, i32
  }
  func.func @transform_4(%arg0: i32) -> (i32, i32) {
    %c0_i32 = arith.constant 0 : i32
    %c0_i32_0 = arith.constant 0 : i32
    %c0_i32_1 = arith.constant 0 : i32
    return %c0_i32, %c0_i32_0 : i32, i32
  }
  func.func @transform_5(%arg0: i32) -> (i32, i32) {
    %c0_i32 = arith.constant 0 : i32
    %c0_i32_0 = arith.constant 0 : i32
    %c0_i32_1 = arith.constant 0 : i32
    return %c0_i32, %c0_i32_0 : i32, i32
  }
  func.func @transform_6(%arg0: i32) -> (i32, i32) {
    %c0_i32 = arith.constant 0 : i32
    %c0_i32_0 = arith.constant 0 : i32
    %c0_i32_1 = arith.constant 0 : i32
    return %c0_i32, %c0_i32_0 : i32, i32
  }
  func.func @transform_7(%arg0: i32) -> (i32, i32) {
    %c0_i32 = arith.constant 0 : i32
    %c0_i32_0 = arith.constant 0 : i32
    return %c0_i32, %arg0 : i32, i32
  }
}

</mosaic_0001>

<bundles_post_ra>
// kernel: tpu_custom_call.1
= control target key start
LH: loop header
LB: loop body
LE: loop exit
PB: predicated region body
PF: predicated region fallthrough
CT: control target
= control target key end

     0   :  { %12 = vsyncpa [#allocation4], 0  ;;  %s2073_s0 = inlined_call_operand.vmem [shape: f32[4,512], index: 0, kind: input, shape index: {}]   ;;  %s2074_s1 = inlined_call_operand.vmem [shape: f32[8,256], index: 1, kind: input, shape index: {}]   ;;  %s2075_s2 = inlined_call_operand.vmem [shape: f32[40,81], index: 2, kind: input, shape index: {}]   ;;  %s2076_s3 = inlined_call_operand.hbm [shape: f32[8,73], index: 3, kind: input, shape index: {}]   ;;  %s2077_s4 = inlined_call_operand.hbm [shape: f32[8,73], index: 4, kind: input, shape index: {}]   ;;  %s2078_s5 = inlined_call_operand.vmem [shape: f32[32,8], index: 5, kind: input, shape index: {}]   ;;  %s2079_s6 = inlined_call_operand.vmem [shape: f32[32,1], index: 6, kind: input, shape index: {}]   ;;  %s2080_s7 = inlined_call_operand.hbm [shape: f32[32,512], index: 7, kind: output, shape index: {}]  }
   0x1   :  { %13 = vsyncpa [#allocation7], 0 }
   0x2   :  { %14 = vsyncpa [#allocation5], 0 }
   0x3   :  { %16 = vsyncpa [#allocation5 + $0x1], 0  ;;  %s1558_s24 = smov 0   ;;  %s1560_s25 = smov 0  }
   0x4   :  { %s1562_s26 = smov 0   ;;  %s1564_s27 = smov 0  }
   0x5 LB: > { %s1579_s28 = sadd.s32 4294967295, %s1502_s27   ;;  %s1226_s29 = sadd.s32 4294967294, %s1502_s27   ;;  %s1502_s27 = sphi %s1564_s27, %s2092_s27   ;;  %s1498_s26 = sphi %s1562_s26, %s2091_s26   ;;  %s1494_s25 = sphi %s1560_s25, %s2090_s25   ;;  %s1490_s24 = sphi %s1558_s24, %s2089_s24  }
   0x6   : > { %s1583_s30 = sadd.s32 1, %s1502_s27   ;;  %s181_s8 = sadd.s32 1, %s1498_s26 }
   0x7   : > { %s178_s9 = ssub.s32 %s1502_s27, %s1583_s30  ;;  %p191_p0 = scmp.ne.s32.totalorder %s1498_s26, %s1494_s25 }
   0x8   : > { %p179_p1 = scmp.eq.s32.totalorder %s178_s9, 0  ;;  %p192_p2 = scmp.eq.s32.totalorder %s1579_s28, 1 }
   0x9   : > { %p197_p3 = scmp.ne.s32.totalorder %s1494_s25, %s1490_s24  ;;  %p198_p4 = scmp.eq.s32.totalorder %s1226_s29, 1 }
   0xa   : > { %s1594_s10 = scalar_select %p179_p1, %s1498_s26, %s181_s8  }
   0xb   : > { %p1596_p5 = por %p192_p2, %p191_p0  ;;  %p1600_p6 = por %p198_p4, %p197_p3 }
   0xc   : > { %p1227_p7 = scmp.ge.s32.totalorder %s1502_s27, 1  ;;  %p205_p8 = scmp.lt.s32.totalorder %s1502_s27, 3 }
   0xd   : > { %p1314_p9 = scmp.eq.s32.totalorder %s1579_s28, 0  ;;  %s223_s16 = sshll.u32 %s2076_s3, 4  ;;  %s224_s16 = int_to_ptr.hbm [resolvable:$true] %s223_s16 }
   0xe   : > { %p1607_p10 = pnand %p1227_p7, %p205_p8  ;;  %s1504_s17 = smov [#allocation3]  }
   0xf   : > { %s225_s18 = sshll.u32 %s1504_s17, 4  ;;  %s235_s21 = sshll.u32 %s2077_s4, 4  ;;  %s226_s18 = int_to_ptr.vmem [resolvable:$true] %s225_s18  ;;  %s236_s21 = int_to_ptr.hbm [resolvable:$true] %s235_s21 }
  0x10   : > { %p1303_p11 = pneg %p1607_p10  ;;  %s1505_s22 = smov [#allocation6]  }
  0x11   : > { %s237_s23 = sshll.u32 %s1505_s22, 4  ;;  %265 = sbr.rel (%p1607_p10) target bundleno = 1078 (0x436), region = 48  ;;  %s238_s23 = int_to_ptr.vmem [resolvable:$true] %s237_s23 }
  0x12   : > { %p1304_p12 = pnand %p1314_p9, %p1303_p11 }
  0x14   : > { %1306 = dma.hbm_to_vmem [thread:$0]  (!%p1304_p12), %s224_s16, 128, %s226_s18, [#allocation4]  }
  0x15   : > { %1309 = dma.hbm_to_vmem [thread:$0]  (!%p1304_p12), %s236_s21, 128, %s238_s23, [#allocation7]  }
  0x16   : > { %1477 = dma.done.wait (%p1314_p9), [#allocation4], 128  }
  0x17   : > { %1479 = vsyncadd (%p1314_p9), [#allocation4], 4294967168 }
  0x18   : > { %1481 = dma.done.wait (%p1314_p9), [#allocation7], 128  }
  0x19   : > { %1483 = vsyncadd (%p1314_p9), [#allocation7], 4294967168  ;;  %s1235_s29 = sshll.u32 %s1579_s28, 1  ;;  %vm318_vm0 = vcmask 1043456   ;;  %s1506_s15 = smov 112   ;;  %v325_v6 = vlaneseq  ;;  %v1514_v8 = vmov 1.0  }
  0x1a   : > { %p304_p13 = scmp.lt.s32.totalorder %s1235_s29, 3  ;;  %s1507_s16 = smov 111   ;;  %vm528_vm2 = vcmask 1040384   ;;  %v1243_v19 = vld [vmem:[%s2074_s1 + $0x7] ss:$8 sm:$0x3] }
  0x1b   : > { %s1508_s17 = smov 113   ;;  %s1509_s18 = smov 127   ;;  %vm1659_vm1 = vcmp.lt.s32.totalorder %v325_v6, 256  ;;  %v1675_v18 = vand.u32 127, %v325_v6  ;;  %v460_v22 = vperm.slane %v1243_v19, 0  ;;  %v461_v23 = vperm.slane %v1243_v19, 1 }
  0x1c   : > { %s2094_s29 = smov (!%p304_p13, %s1235_s29), 3  ;;  %s1510_s19 = smov 1   ;;  %483 = vst.msk [vmem:[#allocation2 + $0xa0] ss:$8 sm:$0x3] %vm1659_vm1, %v1514_v8  ;;  %vm512_vm11 = vcmask 662528  }
  0x1d   : > { %s1236_s8 = sshll.u32 %s2094_s29, 2  ;;  %s1511_s20 = smov 15   ;;  %v1242_v21 = vld [vmem:[%s2074_s1 + $0x6] ss:$8 sm:$0x3]  ;;  %vm436_vm3 = vcmp.lt.s32.totalorder %v1675_v18, 112 }
  0x1e   : > { %s307_s14 = scalar_lea.vmem %s2073_s0, %s1236_s8  ;;  %s1512_s21 = smov 16   ;;  %vm454_vm4 = vcmp.lt.s32.totalorder %v1675_v18, 111  ;;  %v1241_v24 = vld [vmem:[%s2074_s1 + $0x5] ss:$8 sm:$0x3]  ;;  %vm418_vm5 = vcmp.lt.s32.totalorder %v1675_v18, 113 }
  0x1f   : > { %v310_v0 = vld [vmem:[%s307_s14] sm:$0xff]  ;;  %s2081_s22 = smov 17   ;;  %v442_v25 = vperm.slane %v1242_v21, 0  ;;  %v443_v26 = vperm.slane %v1242_v21, 1  ;;  %v424_v33 = vperm.slane %v1241_v24, 0  ;;  %v425_v34 = vperm.slane %v1241_v24, 1 }
  0x20   : > { %v311_v1 = vmax.f32 %v310_v0, 0.0  ;;  %v1240_v39 = vld [vmem:[%s2074_s1 + $0x4] ss:$8 sm:$0x3]  ;;  %vm400_vm6 = vcmp.lt.s32.totalorder %v1675_v18, 127  ;;  %vm380_vm7 = vcmp.lt.s32.totalorder %v1675_v18, 1 }
  0x21   : > { %v406_v45 = vperm.slane %v1240_v39, 0  ;;  %v407_v46 = vperm.slane %v1240_v39, 1  ;;  %v1239_v53 = vld [vmem:[%s2074_s1 + $0x3] ss:$8 sm:$0x3]  ;;  %vm362_vm8 = vcmp.lt.s32.totalorder %v1675_v18, 15 }
  0x22   : > { %313 = vst [vmem:[#allocation1] ss:$2 sm:$0xff] %v311_v1  ;;  %v1238_v54 = vld [vmem:[%s2074_s1 + $0x2] ss:$8 sm:$0x3]  ;;  %v386_v55 = vperm.slane %v1239_v53, 0 }
  0x23   : > { %v510_v12 = vld [vmem:[#allocation2 + $0xa0] sm:$0x1]  ;;  %v511_v13 = vld [vmem:[#allocation2 + $0xa8] sm:$0x1]  ;;  %v387_v56 = vperm.slane %v1239_v53, 1  ;;  %v368_v57 = vperm.slane %v1238_v54, 0 }
  0x24   : > { %1244 = vmatpush.msk.msra.mxu0 %vm528_vm2, %v510_v12  ;;  %1250 = vmatpush.msk.msra.mxu1 %vm528_vm2, %v511_v13  ;;  %v369_v58 = vperm.slane %v1238_v54, 1  ;;  %vm344_vm9 = vcmp.lt.s32.totalorder %v1675_v18, 16  ;;  %vm327_vm10 = vcmp.lt.s32.totalorder %v1675_v18, 17  ;;  %v1262_v7 = vld [vmem:[%s2074_s1 + $0x7] ss:$8 sm:$0x3] }
  0x25   : > { %vm755_vm12 = vcmask 596992   ;;  %v1015_v18 = vld [vmem:[%s2079_s6] sm:$0xff]  ;;  %vm1039_vm13 = vcmask 64512   ;;  %s300_s9 = sand.u32 1, %s1494_s25   ;;  %s1291_s23 = sshll.u32 %s1579_s28, 4 }
  0x26   : > { %s1234_s13 = sshll.u32 %s300_s9, 6 }
  0x27   : > { %s2022_s14 = scalar_lea.vmem [#allocation8], %s1234_s13  ;;  %s1452_s13 = scalar_lea.hbm %s2080_s7, 128 }
  0x29   : > { %v1635_v2 = vld.sshfl [vmem:[#allocation1] sm:$0xff pattern:$0x75316420]  ;;  %v1637_v3 = vld.sshfl [vmem:[#allocation1 + $0x8] sm:$0xff pattern:$0x75316420] }
  0x2a   : > { %v319_v4 = vsel %vm318_vm0, %v1635_v2, 0.0  ;;  %469 = vst [vmem:[#allocation1] ss:$2 sm:$0xff] %v310_v0  ;;  %v320_v5 = vsel %vm318_vm0, %v1637_v3, 0.0 }
  0x2b   : > { %432 = vrot.lane.b32.xlu1 %v319_v4, %s1506_s15  ;;  %450 = vrot.lane.b32.xlu0 %v319_v4, %s1507_s16 }
  0x2c   : > { %414 = vrot.lane.b32.xlu2 %v319_v4, %s1508_s17 }
  0x31   : > { %v470_v9 = vld.sshfl [vmem:[#allocation1] sm:$0xff pattern:$0x75316420]  ;;  %v471_v11 = vld.sshfl [vmem:[#allocation1 + $0x8] sm:$0xff pattern:$0x75316420] }
  0x32   : > { %v474_v10 = vsel %vm318_vm0, %v470_v9, 0.0  ;;  %v475_v14 = vsel %vm318_vm0, %v471_v11, 0.0  ;;  %1368 = vmatpush.msk.msra.mxu0 %vm318_vm0, %v470_v9  ;;  %1369 = vmatpush.msk.msra.mxu1 %vm318_vm0, %v471_v11 }
  0x33   : > { %434 = vrot.lane.b32.xlu1 %v320_v5, %s1506_s15  ;;  %452 = vrot.lane.b32.xlu0 %v320_v5, %s1507_s16  ;;  %476 = vst [vmem:[#allocation2 + $0x90] sm:$0xff] %v474_v10 }
  0x34   : > { %416 = vrot.lane.b32.xlu2 %v320_v5, %s1508_s17  ;;  %477 = vst [vmem:[#allocation2 + $0x98] sm:$0xff] %v475_v14 }
  0x35   : > { %732 = vst.msk [vmem:[#allocation2 + $0x90] ss:$8 sm:$0x3] %vm1659_vm1, %v1514_v8 }
  0x3b   : > { %398 = vrot.lane.b32.xlu1 %v320_v5, %s1509_s18  ;;  %396 = vrot.lane.b32.xlu0 %v319_v4, %s1509_s18 }
  0x3c   : > { %376 = vrot.lane.b32.xlu2 %v319_v4, %s1510_s19 }
  0x43   : > { %358 = vrot.lane.b32.xlu1 %v319_v4, %s1511_s20  ;;  %378 = vrot.lane.b32.xlu0 %v320_v5, %s1510_s19 }
  0x44   : > { %360 = vrot.lane.b32.xlu2 %v320_v5, %s1511_s20 }
  0x4b   : > { %342 = vrot.lane.b32.xlu1 %v320_v5, %s1512_s21  ;;  %340 = vrot.lane.b32.xlu0 %v319_v4, %s1512_s21 }
  0x4c   : > { %321 = vrot.lane.b32.xlu2 %v319_v4, %s2081_s22 }
  0x53   : > { %323 = vrot.lane.b32.xlu0 %v320_v5, %s2081_s22 }
  0x86   : > { %v415_v15 = vpop.permute.xlu2 %414 }
  0x8e   : > { %v417_v20 = vpop.permute.xlu2 %416 }
  0x8f   : > { %v419_v37 = vsel %vm418_vm5, %v415_v15, %v417_v20  ;;  %v420_v38 = vsel %vm418_vm5, %v417_v20, %v415_v15 }
  0x90   : > { %v428_v43 = vmul.f32 %v424_v33, %v419_v37  ;;  %v429_v44 = vmul.f32 %v425_v34, %v420_v38  ;;  %v754_v33 = vld [vmem:[#allocation2 + $0x98] sm:$0x1]  ;;  %v486_v34 = vld [vmem:[%s2075_s2 + $0x8] sm:$0xff]  ;;  %v723_v37 = vperm.slane %v1262_v7, 0  ;;  %v724_v38 = vperm.slane %v1262_v7, 1 }
  0x96   : > { %v377_v42 = vpop.permute.xlu2 %376 }
  0x9d   : > { %v433_v16 = vpop.permute.xlu1 %432  ;;  %v451_v17 = vpop.permute.xlu0 %450 }
  0x9e   : > { %v361_v59 = vpop.permute.xlu2 %360 }
  0xa5   : > { %v435_v27 = vpop.permute.xlu1 %434  ;;  %v453_v28 = vpop.permute.xlu0 %452 }
  0xa6   : > { %v437_v29 = vsel %vm436_vm3, %v433_v16, %v435_v27  ;;  %v438_v30 = vsel %vm436_vm3, %v435_v27, %v433_v16  ;;  %v455_v31 = vsel %vm454_vm4, %v451_v17, %v453_v28  ;;  %v456_v32 = vsel %vm454_vm4, %v453_v28, %v451_v17  ;;  %v330_v17 = vld [vmem:[%s2074_s1] ss:$8 sm:$0x3]  ;;  %v322_v19 = vpop.permute.xlu2 %321 }
  0xa7   : > { %v464_v35 = vmul.f32 %v460_v22, %v455_v31  ;;  %v465_v36 = vmul.f32 %v461_v23, %v456_v32  ;;  %v446_v40 = vmul.f32 %v442_v25, %v437_v29  ;;  %v447_v41 = vmul.f32 %v443_v26, %v438_v30  ;;  %v485_v27 = vld [vmem:[%s2075_s2] sm:$0xff]  ;;  %v753_v32 = vld [vmem:[#allocation2 + $0x90] sm:$0x1] }
  0xa8   : > { %v332_v20 = vperm.slane %v330_v17, 0  ;;  %v333_v21 = vperm.slane %v330_v17, 1  ;;  %937 = vst.msk [vmem:[#allocation2 + $0x90] ss:$8 sm:$0x3] %vm1659_vm1, %v1514_v8  ;;  %v488_v8 = vld [vmem:[%s2075_s2 + $0x18] sm:$0xff] }
  0xa9   : > { %542 = vmatpush.msra.mxu0 %v464_v35  ;;  %574 = vmatpush.msra.mxu1 %v465_v36  ;;  %v487_v35 = vld [vmem:[%s2075_s2 + $0x10] sm:$0xff] }
  0xab   : > { %543 = vmatpush.msra.mxu0 %v446_v40  ;;  %575 = vmatpush.msra.mxu1 %v447_v41 }
  0xad   : > { %v399_v47 = vpop.permute.xlu1 %398  ;;  %v397_v48 = vpop.permute.xlu0 %396  ;;  %544 = vmatpush.msra.mxu0 %v428_v43  ;;  %576 = vmatpush.msra.mxu1 %v429_v44 }
  0xae   : > { %v401_v49 = vsel %vm400_vm6, %v397_v48, %v399_v47  ;;  %v402_v50 = vsel %vm400_vm6, %v399_v47, %v397_v48  ;;  %v489_v47 = vld [vmem:[%s2075_s2 + $0x20] sm:$0xff] }
  0xaf   : > { %v410_v51 = vmul.f32 %v406_v45, %v401_v49  ;;  %v411_v52 = vmul.f32 %v407_v46, %v402_v50  ;;  %v1261_v46 = vld [vmem:[%s2074_s1 + $0x6] ss:$8 sm:$0x3]  ;;  %v1260_v48 = vld [vmem:[%s2074_s1 + $0x5] ss:$8 sm:$0x3] }
  0xb0   : > { %v707_v49 = vperm.slane %v1261_v46, 0  ;;  %v708_v50 = vperm.slane %v1261_v46, 1  ;;  %v692_v53 = vperm.slane %v1260_v48, 1 }
  0xb1   : > { %545 = vmatpush.msra.mxu0 %v410_v51  ;;  %577 = vmatpush.msra.mxu1 %v411_v52  ;;  %v691_v52 = vperm.slane %v1260_v48, 0 }
  0xb3   : > { %1370 = vmatpush.msk.msra.mxu0 %vm318_vm0, %v1635_v2  ;;  %1371 = vmatpush.msk.msra.mxu1 %vm318_vm0, %v1637_v3  ;;  %v1237_v3 = vld [vmem:[%s2074_s1 + $0x1] ss:$8 sm:$0x3] }
  0xb4   : > { %v350_v9 = vperm.slane %v1237_v3, 0  ;;  %v351_v10 = vperm.slane %v1237_v3, 1 }
  0xb5   : > { %v359_v60 = vpop.permute.xlu1 %358  ;;  %v379_v61 = vpop.permute.xlu0 %378 }
  0xb6   : > { %v381_v62 = vsel %vm380_vm7, %v377_v42, %v379_v61  ;;  %v382_v63 = vsel %vm380_vm7, %v379_v61, %v377_v42  ;;  %v363_v0 = vsel %vm362_vm8, %v359_v60, %v361_v59  ;;  %v364_v1 = vsel %vm362_vm8, %v361_v59, %v359_v60  ;;  %v1259_v61 = vld [vmem:[%s2074_s1 + $0x4] ss:$8 sm:$0x3] }
  0xb7   : > { %v390_v4 = vmul.f32 %v386_v55, %v382_v63  ;;  %v391_v5 = vmul.f32 %v387_v56, %v381_v62  ;;  %v372_v2 = vmul.f32 %v368_v57, %v364_v1  ;;  %v373_v6 = vmul.f32 %v369_v58, %v363_v0 }
  0xb8   : > { %v675_v1 = vperm.slane %v1259_v61, 0 }
  0xb9   : > { %547 = vmatpush.msra.mxu0 %v390_v4  ;;  %579 = vmatpush.msra.mxu1 %v391_v5  ;;  %v676_v4 = vperm.slane %v1259_v61, 1 }
  0xbb   : > { %548 = vmatpush.msra.mxu0 %v372_v2  ;;  %580 = vmatpush.msra.mxu1 %v373_v6 }
  0xbd   : > { %v343_v11 = vpop.permute.xlu1 %342  ;;  %v341_v12 = vpop.permute.xlu0 %340 }
  0xbe   : > { %v345_v13 = vsel %vm344_vm9, %v341_v12, %v343_v11  ;;  %v346_v14 = vsel %vm344_vm9, %v343_v11, %v341_v12  ;;  %v1258_v11 = vld [vmem:[%s2074_s1 + $0x3] ss:$8 sm:$0x3]  ;;  %v1257_v12 = vld [vmem:[%s2074_s1 + $0x2] ss:$8 sm:$0x3] }
  0xbf   : > { %v354_v15 = vmul.f32 %v350_v9, %v346_v14  ;;  %v355_v16 = vmul.f32 %v351_v10, %v345_v13  ;;  %v657_v14 = vperm.slane %v1258_v11, 0  ;;  %v641_v17 = vperm.slane %v1257_v12, 0 }
  0xc1   : > { %549 = vmatpush.msra.mxu0 %v354_v15  ;;  %581 = vmatpush.msra.mxu1 %v355_v16  ;;  %v658_v15 = vperm.slane %v1258_v11, 1 }
  0xc5   : > { %v324_v22 = vpop.permute.xlu0 %323 }
  0xc6   : > { %v328_v23 = vsel %vm327_vm10, %v322_v19, %v324_v22  ;;  %v329_v24 = vsel %vm327_vm10, %v324_v22, %v322_v19  ;;  %v642_v19 = vperm.slane %v1257_v12, 1 }
  0xc7   : > { %v336_v25 = vmul.f32 %v332_v20, %v329_v24  ;;  %v337_v26 = vmul.f32 %v333_v21, %v328_v23 }
  0xc9   : > { %550 = vmatpush.msra.mxu0 %v336_v25  ;;  %582 = vmatpush.msra.mxu1 %v337_v26 }
  0xca   : > { %1245 = vmatmul.msk.f32.vlgmr.msra.gmra.mxu0 %vm512_vm11, %v485_v27  ;;  %1251 = vmatmul.msk.f32.vlgmr.msra.gmra.mxu1 %vm512_vm11, %v485_v27  ;;  %v1256_v27 = vld [vmem:[%s2074_s1 + $0x1] ss:$8 sm:$0x3] }
  0xcb   : > { %1263 = vmatpush.msk.msrb.mxu0 %vm528_vm2, %v753_v32  ;;  %1265 = vmatpush.msk.msrb.mxu1 %vm528_vm2, %v754_v33 }
  0xd2   : > { %1246 = vmatmul.msk.f32.gmra.mxu0 %vm512_vm11, %v486_v34  ;;  %1252 = vmatmul.msk.f32.gmra.mxu1 %vm512_vm11, %v486_v34 }
  0xda   : > { %1247 = vmatmul.msk.f32.gmra.mxu0 %vm512_vm11, %v487_v35  ;;  %1253 = vmatmul.msk.f32.gmra.mxu1 %vm512_vm11, %v487_v35 }
  0xe2   : > { %1248 = vmatmul.msk.f32.gmra.mxu0 %vm512_vm11, %v488_v8  ;;  %1254 = vmatmul.msk.f32.gmra.mxu1 %vm512_vm11, %v488_v8  ;;  %v607_v8 = vld [vmem:[%s2074_s1] ss:$8 sm:$0x3] }
  0xea   : > { %1249 = vmatmul.msk.f32.gmra.mxu0 %vm512_vm11, %v489_v47  ;;  %1255 = vmatmul.msk.f32.gmra.mxu1 %vm512_vm11, %v489_v47 }
 0x147   : > { %v552_v28 = vpop.f32.mrf.mxu0  ;;  %v584_v29 = vpop.f32.mrf.mxu1 }
 0x148   : > { %v1750_v30 = vmax.f32 %v552_v28, 0.0  ;;  %v1752_v31 = vmax.f32 %v584_v29, 0.0 }
 0x14a   : > { %717 = vrot.lane.b32.xlu2 %v1752_v31, %s1507_s16  ;;  %699 = vrot.lane.b32.xlu0 %v1750_v30, %s1506_s15 }
 0x14b   : > { %715 = vrot.lane.b32.xlu1 %v1750_v30, %s1507_s16 }
 0x14f   : > { %v1871_v46 = vpop.f32.mrf.mxu0  ;;  %v1873_v47 = vpop.f32.mrf.mxu1 }
 0x152   : > { %683 = vrot.lane.b32.xlu2 %v1750_v30, %s1508_s17  ;;  %685 = vrot.lane.b32.xlu0 %v1752_v31, %s1508_s17 }
 0x153   : > { %701 = vrot.lane.b32.xlu1 %v1752_v31, %s1506_s15 }
 0x157   : > { %v1875_v48 = vpop.f32.mrf.mxu0 }
 0x15a   : > { %669 = vrot.lane.b32.xlu2 %v1752_v31, %s1509_s18  ;;  %649 = vrot.lane.b32.xlu0 %v1750_v30, %s1510_s19 }
 0x15b   : > { %667 = vrot.lane.b32.xlu1 %v1750_v30, %s1509_s18 }
 0x162   : > { %633 = vrot.lane.b32.xlu2 %v1750_v30, %s1511_s20  ;;  %635 = vrot.lane.b32.xlu0 %v1752_v31, %s1511_s20 }
 0x163   : > { %651 = vrot.lane.b32.xlu1 %v1752_v31, %s1510_s19 }
 0x16a   : > { %619 = vrot.lane.b32.xlu2 %v1752_v31, %s1512_s21  ;;  %601 = vrot.lane.b32.xlu0 %v1750_v30, %s2081_s22 }
 0x16b   : > { %617 = vrot.lane.b32.xlu1 %v1750_v30, %s1512_s21 }
 0x173   : > { %603 = vrot.lane.b32.xlu1 %v1752_v31, %s2081_s22 }
 0x1a4   : > { %v718_v36 = vpop.permute.xlu2 %717 }
 0x1ac   : > { %v684_v43 = vpop.permute.xlu2 %683 }
 0x1b4   : > { %v670_v62 = vpop.permute.xlu2 %669 }
 0x1bc   : > { %v700_v39 = vpop.permute.xlu0 %699  ;;  %v634_v13 = vpop.permute.xlu2 %633 }
 0x1bd   : > { %v716_v40 = vpop.permute.xlu1 %715 }
 0x1be   : > { %v719_v41 = vsel %vm454_vm4, %v716_v40, %v718_v36  ;;  %v720_v42 = vsel %vm454_vm4, %v718_v36, %v716_v40 }
 0x1bf   : > { %v727_v44 = vmul.f32 %v723_v37, %v719_v41  ;;  %v728_v45 = vmul.f32 %v724_v38, %v720_v42  ;;  %v609_v37 = vperm.slane %v607_v8, 0  ;;  %v610_v38 = vperm.slane %v607_v8, 1 }
 0x1c1   : > { %772 = vmatpush.msrb.mxu0 %v727_v44  ;;  %792 = vmatpush.msrb.mxu1 %v728_v45  ;;  %v734_v45 = vld [vmem:[#allocation3] sm:$0xff] }
 0x1c4   : > { %v686_v51 = vpop.permute.xlu0 %685  ;;  %v620_v32 = vpop.permute.xlu2 %619 }
 0x1c5   : > { %v702_v54 = vpop.permute.xlu1 %701  ;;  %v687_v55 = vsel %vm418_vm5, %v684_v43, %v686_v51  ;;  %v688_v56 = vsel %vm418_vm5, %v686_v51, %v684_v43 }
 0x1c6   : > { %v703_v57 = vsel %vm436_vm3, %v700_v39, %v702_v54  ;;  %v704_v58 = vsel %vm436_vm3, %v702_v54, %v700_v39  ;;  %v695_v63 = vmul.f32 %v691_v52, %v687_v55  ;;  %v696_v0 = vmul.f32 %v692_v53, %v688_v56 }
 0x1c7   : > { %v711_v59 = vmul.f32 %v707_v49, %v703_v57  ;;  %v712_v60 = vmul.f32 %v708_v50, %v704_v58  ;;  %v1877_v49 = vpop.f32.mrf.mxu1  ;;  %v1879_v50 = vpop.f32.mrf.mxu0  ;;  %v958_v58 = vld [vmem:[#allocation2 + $0x90] sm:$0x1] }
 0x1c8   : > { %1274 = vmatpush.msk.msra.mxu2 %vm528_vm2, %v958_v58 }
 0x1c9   : > { %773 = vmatpush.msrb.mxu0 %v711_v59  ;;  %793 = vmatpush.msrb.mxu1 %v712_v60  ;;  %v959_v59 = vld [vmem:[#allocation2 + $0x98] sm:$0x1] }
 0x1ca   : > { %1276 = vmatpush.msk.msra.mxu3 %vm528_vm2, %v959_v59 }
 0x1cb   : > { %774 = vmatpush.msrb.mxu0 %v695_v63  ;;  %794 = vmatpush.msrb.mxu1 %v696_v0  ;;  %v1272_v63 = vld [vmem:[%s2074_s1 + $0x6] ss:$8 sm:$0x3] }
 0x1cc   : > { %v650_v5 = vpop.permute.xlu0 %649 }
 0x1cd   : > { %v668_v2 = vpop.permute.xlu1 %667 }
 0x1ce   : > { %v671_v6 = vsel %vm400_vm6, %v668_v2, %v670_v62  ;;  %v672_v3 = vsel %vm400_vm6, %v670_v62, %v668_v2  ;;  %v1273_v62 = vld [vmem:[%s2074_s1 + $0x7] ss:$8 sm:$0x3] }
 0x1cf   : > { %v679_v9 = vmul.f32 %v675_v1, %v671_v6  ;;  %v680_v10 = vmul.f32 %v676_v4, %v672_v3  ;;  %v1881_v51 = vpop.f32.mrf.mxu1  ;;  %v1883_v52 = vpop.f32.mrf.mxu0  ;;  %v929_v0 = vperm.slane %v1273_v62, 0  ;;  %v930_v1 = vperm.slane %v1273_v62, 1  ;;  %v1267_v62 = vld [vmem:[%s2074_s1 + $0x1] ss:$8 sm:$0x3] }
 0x1d0   : > { %v913_v4 = vperm.slane %v1272_v63, 0 }
 0x1d1   : > { %775 = vmatpush.msrb.mxu0 %v679_v9  ;;  %795 = vmatpush.msrb.mxu1 %v680_v10 }
 0x1d3   : > { %776 = vmatpush.msrb.mxu0 %v1750_v30  ;;  %796 = vmatpush.msrb.mxu1 %v1752_v31  ;;  %v625_v30 = vperm.slane %v1256_v27, 0  ;;  %v626_v31 = vperm.slane %v1256_v27, 1 }
 0x1d4   : > { %v636_v16 = vpop.permute.xlu0 %635 }
 0x1d5   : > { %v652_v20 = vpop.permute.xlu1 %651  ;;  %v637_v21 = vsel %vm362_vm8, %v634_v13, %v636_v16  ;;  %v638_v22 = vsel %vm362_vm8, %v636_v16, %v634_v13 }
 0x1d6   : > { %v653_v23 = vsel %vm380_vm7, %v650_v5, %v652_v20  ;;  %v654_v24 = vsel %vm380_vm7, %v652_v20, %v650_v5  ;;  %v645_v28 = vmul.f32 %v641_v17, %v638_v22  ;;  %v646_v29 = vmul.f32 %v642_v19, %v637_v21  ;;  %v1271_v17 = vld [vmem:[%s2074_s1 + $0x5] ss:$8 sm:$0x3] }
 0x1d7   : > { %v661_v25 = vmul.f32 %v657_v14, %v654_v24  ;;  %v662_v26 = vmul.f32 %v658_v15, %v653_v23  ;;  %v1885_v53 = vpop.f32.mrf.mxu1  ;;  %v914_v5 = vperm.slane %v1272_v63, 1  ;;  %v897_v19 = vperm.slane %v1271_v17, 0 }
 0x1d8   : > { %v898_v20 = vperm.slane %v1271_v17, 1  ;;  %v832_v63 = vperm.slane %v1267_v62, 1  ;;  %v1016_v17 = vld [vmem:[%s2079_s6 + $0x8] sm:$0xff] }
 0x1d9   : > { %777 = vmatpush.msrb.mxu0 %v661_v25  ;;  %797 = vmatpush.msrb.mxu1 %v662_v26 }
 0x1db   : > { %778 = vmatpush.msrb.mxu0 %v645_v28  ;;  %798 = vmatpush.msrb.mxu1 %v646_v29  ;;  %v1270_v28 = vld [vmem:[%s2074_s1 + $0x4] ss:$8 sm:$0x3]  ;;  %v1269_v29 = vld [vmem:[%s2074_s1 + $0x3] ss:$8 sm:$0x3] }
 0x1dc   : > { %v602_v39 = vpop.permute.xlu0 %601 }
 0x1dd   : > { %v618_v33 = vpop.permute.xlu1 %617 }
 0x1de   : > { %v621_v34 = vsel %vm344_vm9, %v618_v33, %v620_v32  ;;  %v622_v35 = vsel %vm344_vm9, %v620_v32, %v618_v33  ;;  %v863_v32 = vperm.slane %v1269_v29, 0  ;;  %v864_v33 = vperm.slane %v1269_v29, 1 }
 0x1df   : > { %v629_v36 = vmul.f32 %v625_v30, %v622_v35  ;;  %v630_v7 = vmul.f32 %v626_v31, %v621_v34  ;;  %v881_v30 = vperm.slane %v1270_v28, 0  ;;  %v882_v31 = vperm.slane %v1270_v28, 1  ;;  %v1012_v28 = vld [vmem:[%s2078_s5 + $0x18] sm:$0xff] }
 0x1e1   : > { %779 = vmatpush.msrb.mxu0 %v629_v36  ;;  %799 = vmatpush.msrb.mxu1 %v630_v7 }
 0x1e5   : > { %v604_v40 = vpop.permute.xlu1 %603 }
 0x1e6   : > { %v605_v41 = vsel %vm327_vm10, %v602_v39, %v604_v40  ;;  %v606_v42 = vsel %vm327_vm10, %v604_v40, %v602_v39 }
 0x1e7   : > { %v613_v43 = vmul.f32 %v609_v37, %v606_v42  ;;  %v614_v44 = vmul.f32 %v610_v38, %v605_v41  ;;  %v1268_v42 = vld [vmem:[%s2074_s1 + $0x2] ss:$8 sm:$0x3] }
 0x1e9   : > { %780 = vmatpush.msrb.mxu0 %v613_v43  ;;  %800 = vmatpush.msrb.mxu1 %v614_v44  ;;  %v847_v44 = vperm.slane %v1268_v42, 0 }
 0x1ea   : > { %1264 = vmatmul.msk.f32.vlgmr.msrb.gmra.mxu0 %vm755_vm12, %v734_v45  ;;  %1266 = vmatmul.msk.f32.vlgmr.msrb.gmra.mxu1 %vm755_vm12, %v734_v45  ;;  %v848_v45 = vperm.slane %v1268_v42, 1 }
 0x267   : > { %v782_v54 = vpop.f32.mrf.mxu0  ;;  %v802_v55 = vpop.f32.mrf.mxu1 }
 0x268   : > { %v1887_v56 = vmax.f32 %v782_v54, 0.0  ;;  %v1889_v57 = vmax.f32 %v802_v55, 0.0 }
 0x26a   : > { %923 = vrot.lane.b32.xlu0 %v1889_v57, %s1507_s16  ;;  %905 = vrot.lane.b32.xlu1 %v1887_v56, %s1506_s15 }
 0x26b   : > { %921 = vrot.lane.b32.xlu2 %v1887_v56, %s1507_s16  ;;  %s1139_s16 = sshll.u32 %s2022_s14, 4  ;;  %s1140_s16 = int_to_ptr.vmem [resolvable:$true] %s1139_s16 }
 0x272   : > { %889 = vrot.lane.b32.xlu0 %v1887_v56, %s1508_s17  ;;  %891 = vrot.lane.b32.xlu1 %v1889_v57, %s1508_s17 }
 0x273   : > { %907 = vrot.lane.b32.xlu2 %v1889_v57, %s1506_s15  ;;  %s2088_s15 = smov 17  }
 0x27a   : > { %875 = vrot.lane.b32.xlu0 %v1889_v57, %s1509_s18  ;;  %855 = vrot.lane.b32.xlu1 %v1887_v56, %s1510_s19 }
 0x27b   : > { %873 = vrot.lane.b32.xlu2 %v1887_v56, %s1509_s18  ;;  %s1127_s18 = scalar_lea.sflag [#allocation5], %s300_s9 }
 0x282   : > { %839 = vrot.lane.b32.xlu0 %v1887_v56, %s1511_s20  ;;  %841 = vrot.lane.b32.xlu1 %v1889_v57, %s1511_s20 }
 0x283   : > { %857 = vrot.lane.b32.xlu2 %v1889_v57, %s1510_s19 }
 0x28a   : > { %825 = vrot.lane.b32.xlu0 %v1889_v57, %s1512_s21  ;;  %807 = vrot.lane.b32.xlu1 %v1887_v56, %s2088_s15 }
 0x28b   : > { %823 = vrot.lane.b32.xlu2 %v1887_v56, %s1512_s21 }
 0x293   : > { %809 = vrot.lane.b32.xlu2 %v1889_v57, %s2088_s15  ;;  %s1138_s15 = scalar_lea.hbm %s2080_s7, %s1291_s23 }
 0x294   : > { %s1141_s17 = sshll.u32 %s1138_s15, 4  ;;  %s1142_s17 = int_to_ptr.hbm [resolvable:$true] %s1141_s17 }
 0x295   : > { %s1446_s28 = sshra.s32 %s1142_s17, 4  ;;  %s1447_s28 = int_to_ptr.hbm [resolvable:$true] %s1446_s28 }
 0x296   : > { %s1448_s19 = scalar_lea.hbm %s1447_s28, 64  ;;  %p1453_p3 = scmp.lt.s32.totalorder %s1447_s28, %s2080_s7 }
 0x297   : > { %p1449_p0 = scmp.ne.s32.totalorder %s1447_s28, %s1448_s19  ;;  %p1454_p4 = scmp.lt.s32.totalorder %s1452_s13, %s1448_s19 }
 0x299   : > { %p1450_p1 = pnand %p1449_p0, %p1596_p5  ;;  %p1455_p7 = por %p1454_p4, %p1453_p3 }
 0x29b   : > { %p1451_p2 = pneg %p1450_p1 }
 0x29d   : > { %p1456_p8 = pnand %p1455_p7, %p1451_p2 }
 0x2c5   : > { %v922_v60 = vpop.permute.xlu2 %921 }
 0x2cd   : > { %v908_v61 = vpop.permute.xlu2 %907 }
 0x2d5   : > { %v874_v3 = vpop.permute.xlu2 %873 }
 0x2dc   : > { %v924_v2 = vpop.permute.xlu0 %923  ;;  %v906_v6 = vpop.permute.xlu1 %905 }
 0x2dd   : > { %v925_v9 = vsel %vm454_vm4, %v922_v60, %v924_v2  ;;  %v926_v10 = vsel %vm454_vm4, %v924_v2, %v922_v60  ;;  %v909_v11 = vsel %vm436_vm3, %v906_v6, %v908_v61  ;;  %v910_v12 = vsel %vm436_vm3, %v908_v61, %v906_v6  ;;  %v858_v27 = vpop.permute.xlu2 %857 }
 0x2de   : > { %v933_v13 = vmul.f32 %v929_v0, %v925_v9  ;;  %v934_v14 = vmul.f32 %v930_v1, %v926_v10  ;;  %v917_v15 = vmul.f32 %v913_v4, %v909_v11  ;;  %v918_v16 = vmul.f32 %v914_v5, %v910_v12 }
 0x2e0   : > { %976 = vmatpush.msra.mxu2 %v933_v13  ;;  %996 = vmatpush.msra.mxu3 %v934_v14 }
 0x2e2   : > { %977 = vmatpush.msra.mxu2 %v917_v15  ;;  %997 = vmatpush.msra.mxu3 %v918_v16  ;;  %v939_v15 = vld [vmem:[#allocation6] sm:$0xff]  ;;  %v1515_v16 = vmov 0  }
 0x2e3   : > { %1366 = vset.pattern.permute.xlu1 %v1515_v16  ;;  %1365 = vset.pattern.permute.xlu0 %v1515_v16 }
 0x2e4   : > { %v890_v21 = vpop.permute.xlu0 %889  ;;  %v892_v22 = vpop.permute.xlu1 %891  ;;  %1367 = vset.pattern.permute.xlu2 %v1515_v16  ;;  %1021 = vperm.xlu0 %1365, %v1015_v18  }
 0x2e5   : > { %v893_v23 = vsel %vm418_vm5, %v890_v21, %v892_v22  ;;  %v894_v24 = vsel %vm418_vm5, %v892_v22, %v890_v21  ;;  %v824_v43 = vpop.permute.xlu2 %823  ;;  %1026 = vperm.xlu1 %1366, %v1016_v17  }
 0x2e6   : > { %v901_v25 = vmul.f32 %v897_v19, %v893_v23  ;;  %v902_v26 = vmul.f32 %v898_v20, %v894_v24  ;;  %v1009_v23 = vld [vmem:[%s2078_s5] sm:$0xff]  ;;  %v1010_v24 = vld [vmem:[%s2078_s5 + $0x8] sm:$0xff] }
 0x2e8   : > { %978 = vmatpush.msra.mxu2 %v901_v25  ;;  %998 = vmatpush.msra.mxu3 %v902_v26  ;;  %v1018_v25 = vld [vmem:[%s2079_s6 + $0x18] sm:$0xff]  ;;  %v1017_v26 = vld [vmem:[%s2079_s6 + $0x10] sm:$0xff] }
 0x2e9   : > { %1031 = vperm.xlu2 %1367, %v1017_v26  }
 0x2ec   : > { %v876_v34 = vpop.permute.xlu0 %875  ;;  %v856_v35 = vpop.permute.xlu1 %855 }
 0x2ed   : > { %v877_v36 = vsel %vm400_vm6, %v874_v3, %v876_v34  ;;  %v878_v7 = vsel %vm400_vm6, %v876_v34, %v874_v3  ;;  %v859_v8 = vsel %vm380_vm7, %v856_v35, %v858_v27  ;;  %v860_v37 = vsel %vm380_vm7, %v858_v27, %v856_v35  ;;  %v810_v1 = vpop.permute.xlu2 %809  ;;  %1036 = vperm.xlu1 %1366, %v1018_v25   ;;  %v1011_v27 = vld [vmem:[%s2078_s5 + $0x10] sm:$0xff] }
 0x2ee   : > { %v885_v38 = vmul.f32 %v881_v30, %v877_v36  ;;  %v886_v39 = vmul.f32 %v882_v31, %v878_v7  ;;  %v867_v40 = vmul.f32 %v863_v32, %v860_v37  ;;  %v868_v41 = vmul.f32 %v864_v33, %v859_v8 }
 0x2f0   : > { %979 = vmatpush.msra.mxu2 %v885_v38  ;;  %999 = vmatpush.msra.mxu3 %v886_v39 }
 0x2f2   : > { %980 = vmatpush.msra.mxu2 %v1887_v56  ;;  %1000 = vmatpush.msra.mxu3 %v1889_v57  ;;  %v813_v56 = vld [vmem:[%s2074_s1] ss:$8 sm:$0x3]  ;;  %v831_v57 = vperm.slane %v1267_v62, 0 }
 0x2f3   : > { %v815_v0 = vperm.slane %v813_v56, 0  ;;  %v816_v4 = vperm.slane %v813_v56, 1 }
 0x2f4   : > { %v840_v54 = vpop.permute.xlu0 %839  ;;  %v842_v55 = vpop.permute.xlu1 %841  ;;  %981 = vmatpush.msra.mxu2 %v867_v40  ;;  %1001 = vmatpush.msra.mxu3 %v868_v41 }
 0x2f5   : > { %v843_v58 = vsel %vm362_vm8, %v840_v54, %v842_v55  ;;  %v844_v59 = vsel %vm362_vm8, %v842_v55, %v840_v54 }
 0x2f6   : > { %v851_v60 = vmul.f32 %v847_v44, %v844_v59  ;;  %v852_v61 = vmul.f32 %v848_v45, %v843_v58 }
 0x2f8   : > { %982 = vmatpush.msra.mxu2 %v851_v60  ;;  %1002 = vmatpush.msra.mxu3 %v852_v61 }
 0x2fc   : > { %v826_v5 = vpop.permute.xlu0 %825  ;;  %v808_v2 = vpop.permute.xlu1 %807 }
 0x2fd   : > { %v827_v6 = vsel %vm344_vm9, %v824_v43, %v826_v5  ;;  %v828_v3 = vsel %vm344_vm9, %v826_v5, %v824_v43  ;;  %v811_v9 = vsel %vm327_vm10, %v808_v2, %v810_v1  ;;  %v812_v10 = vsel %vm327_vm10, %v810_v1, %v808_v2 }
 0x2fe   : > { %v835_v11 = vmul.f32 %v831_v57, %v828_v3  ;;  %v836_v12 = vmul.f32 %v832_v63, %v827_v6  ;;  %v819_v13 = vmul.f32 %v815_v0, %v812_v10  ;;  %v820_v14 = vmul.f32 %v816_v4, %v811_v9 }
 0x300   : > { %983 = vmatpush.msra.mxu2 %v835_v11  ;;  %1003 = vmatpush.msra.mxu3 %v836_v12 }
 0x302   : > { %984 = vmatpush.msra.mxu2 %v819_v13  ;;  %1004 = vmatpush.msra.mxu3 %v820_v14 }
 0x303   : > { %1275 = vmatmul.msk.f32.vlgmr.msra.gmra.mxu2 %vm755_vm12, %v939_v15  ;;  %1277 = vmatmul.msk.f32.vlgmr.msra.gmra.mxu3 %vm755_vm12, %v939_v15 }
 0x343   : > { %v1032_v7 = vpop.permute.xlu2 %1031 }
 0x356   : > { %v1022_v29 = vpop.permute.xlu0 %1021 }
 0x357   : > { %v1027_v30 = vpop.permute.xlu1 %1026 }
 0x35f   : > { %v1037_v40 = vpop.permute.xlu1 %1036 }
 0x386   : > { %v986_v19 = vpop.f32.mrf.mxu2  ;;  %v1006_v20 = vpop.f32.mrf.mxu3 }
 0x387   : > { %v1013_v21 = vmax.f32 %v986_v19, 0.0  ;;  %v1014_v22 = vmax.f32 %v1006_v20, 0.0 }
 0x389   : > { %1067 = vmatpush.msrb.mxu2 %v1013_v21  ;;  %1292 = vmatpush.msrb.mxu3 %v1014_v22 }
 0x38a   : > { %1278 = vmatmul.msk.f32.vlgmr.msrb.gmra.mxu2 %vm1039_vm13, %v1009_v23  ;;  %1283 = vmatmul.msk.f32.vlgmr.msrb.gmra.mxu3 %vm1039_vm13, %v1010_v24 }
 0x38b   : > { %1096 = vmatpush.msra.mxu2 %v1014_v22 }
 0x392   : > { %1279 = vmatmul.msk.f32.gmra.mxu2 %vm1039_vm13, %v1010_v24  ;;  %1284 = vmatmul.msk.f32.gmra.mxu3 %vm1039_vm13, %v1011_v27 }
 0x39a   : > { %1280 = vmatmul.msk.f32.gmra.mxu2 %vm1039_vm13, %v1011_v27  ;;  %1285 = vmatmul.msk.f32.gmra.mxu3 %vm1039_vm13, %v1012_v28 }
 0x3a2   : > { %1281 = vmatmul.msk.f32.gmra.mxu2 %vm1039_vm13, %v1012_v28 }
 0x3aa   : > { %1282 = vmatmul.msk.f32.vlgmr.msra.gmra.mxu2 %vm1039_vm13, %v1009_v23 }
 0x40d   : > { %v1069_v31 = vpop.f32.mrf.mxu2  ;;  %v1101_v32 = vpop.f32.mrf.mxu3 }
 0x40e   : > { %v1070_v33 = vadd.f32 %v1069_v31, %v1022_v29  ;;  %v1102_v34 = vadd.f32 %v1101_v32, %v1027_v30 }
 0x410   : > { %v1110_v35 = vadd.f32 %v1070_v33, %v1871_v46  ;;  %v1113_v36 = vadd.f32 %v1102_v34, %v1877_v49 }
 0x412   : > { %1118 = vst [vmem:[%s2022_s14] sm:$0xff] %v1110_v35 }
 0x413   : > { %1121 = vst [vmem:[%s2022_s14 + $0x18] sm:$0xff] %v1113_v36 }
 0x415   : > { %v1104_v8 = vpop.f32.mrf.mxu3  ;;  %v1072_v37 = vpop.f32.mrf.mxu2 }
 0x416   : > { %v1105_v38 = vadd.f32 %v1104_v8, %v1032_v7  ;;  %v1073_v39 = vadd.f32 %v1072_v37, %v1027_v30 }
 0x418   : > { %v1115_v46 = vadd.f32 %v1105_v38, %v1881_v51  ;;  %v1112_v49 = vadd.f32 %v1073_v39, %v1875_v48 }
 0x41a   : > { %1123 = vst [vmem:[%s2022_s14 + $0x28] sm:$0xff] %v1115_v46 }
 0x41b   : > { %1120 = vst [vmem:[%s2022_s14 + $0x10] sm:$0xff] %v1112_v49 }
 0x41d   : > { %v1075_v41 = vpop.f32.mrf.mxu2  ;;  %v1107_v42 = vpop.f32.mrf.mxu3 }
 0x41e   : > { %v1076_v43 = vadd.f32 %v1075_v41, %v1032_v7  ;;  %v1108_v44 = vadd.f32 %v1107_v42, %v1037_v40 }
 0x420   : > { %v1114_v45 = vadd.f32 %v1076_v43, %v1879_v50  ;;  %v1117_v54 = vadd.f32 %v1108_v44, %v1885_v53 }
 0x422   : > { %1122 = vst [vmem:[%s2022_s14 + $0x20] sm:$0xff] %v1114_v45 }
 0x423   : > { %1125 = vst [vmem:[%s2022_s14 + $0x38] sm:$0xff] %v1117_v54 }
 0x425   : > { %v1078_v51 = vpop.f32.mrf.mxu2 }
 0x426   : > { %v1079_v55 = vadd.f32 %v1078_v51, %v1037_v40 }
 0x428   : > { %v1116_v48 = vadd.f32 %v1079_v55, %v1883_v52 }
 0x42a   : > { %1124 = vst [vmem:[%s2022_s14 + $0x30] sm:$0xff] %v1116_v48 }
 0x42d   : > { %v1098_v58 = vpop.f32.mrf.mxu2 }
 0x42e   : > { %v1099_v50 = vadd.f32 %v1098_v58, %v1022_v29 }
 0x430   : > { %v1111_v53 = vadd.f32 %v1099_v50, %v1873_v47 }
 0x432   : > { %1119 = vst [vmem:[%s2022_s14 + $0x8] sm:$0xff] %v1111_v53 }
 0x433   : > { %1459 = shalt.err (!%p1456_p8)
}
 0x434   : > { %s1516_s9 = smov 256   ;;  %s1517_s14 = smov 512  }
 0x435   : > { %1301 = dma.vmem_to_hbm [thread:$0]  (%p1596_p5), %s1140_s16, 1024, %s1142_s17, %s1127_s18, %s1516_s9, %s1517_s14, %s1512_s21  }
 0x436 PF: > { %p1318_p9 = scmp.ge.s32.totalorder %s1502_s27, 2  ;;  %s1156_s22 = sand.u32 1, %s1490_s24  }
 0x437   : > { %s1157_s15 = scalar_lea.sflag [#allocation5], %s1156_s22 }
 0x438   : > { %p1311_p10 = pnand %p1318_p9, %p1600_p6 }
 0x43a   : > { %p1312_p11 = pneg %p1311_p10 }
 0x43c   : > { %1485 = dma.done.wait (%p1312_p11), %s1157_s15, 1024  }
 0x43d   : > { %1487 = vsyncadd (%p1312_p11), %s1157_s15, 4294966272  ;;  %p19_p12 = scmp.ge.s32.totalorder %s1583_s30, 4   ;;  %s2089_s24 = smov %s1494_s25 }
 0x43e   : > { %s2090_s25 = smov %s1498_s26  ;;  %s2091_s26 = smov %s1594_s10 }
 0x43f   : > { %s2092_s27 = smov %s1583_s30  ;;  %21 = sbr.rel (!%p19_p12) target bundleno = 5 (0x5), region = 101 }
 0x444   :  { %1163 = vsyncpa [#allocation4], 1 }
 0x445   :  { %1165 = vsyncpa [#allocation4 + $0x1], 1 }
 0x446   :  { %1166 = vsyncpa [#allocation7], 1 }
 0x447   :  { %1167 = vsyncpa [#allocation5], 1 }
 0x448   :  { %1169 = vsyncpa [#allocation5 + $0x1], 1 }

</bundles_post_ra>
